<compile_context>
chip_gen: v7x
topology: tpu7x:2x2x1
jax: 0.10.0
libtpu: 0.0.40
codegen_flags: <defaults>
</compile_context>

<pallas_src>
import functools
import math

import jax
import jax.numpy as jnp
from jax import lax
from jax.experimental import pallas as pl
from jax.experimental.pallas import tpu as pltpu


def _round_up(x, m):
    return ((x + m - 1) // m) * m


def _ffnn_attn_kernel(m1_ref, m2_ref,
                      wq_ref, bq_ref, wk_ref, bk_ref, wv_ref, bv_ref,
                      wh_ref, bh_ref, wo_ref, bo_ref,
                      pred_ref,
                      q_sc, m_sc, l_sc, acc_sc,
                      *, num_hidden_layers, hidden_dim, n2, tile_k):
    kv = pl.program_id(1)
    last_kv = pl.num_programs(1) - 1

    @pl.when(kv == 0)
    def _init():
        # Q projection once per query tile; kept resident (bf16) across the kv axis.
        q = jnp.dot(m1_ref[...], wq_ref[...],
                    preferred_element_type=jnp.float32) + bq_ref[...]
        q_sc[...] = q.astype(jnp.bfloat16)
        m_sc[...] = jnp.full_like(m_sc, -jnp.inf)
        l_sc[...] = jnp.zeros_like(l_sc)
        acc_sc[...] = jnp.zeros_like(acc_sc)

    # K / V projections for this key/value tile (bf16 operands, f32 accumulation).
    k = jnp.dot(m2_ref[...], wk_ref[...],
                preferred_element_type=jnp.float32) + bk_ref[...]
    v = jnp.dot(m2_ref[...], wv_ref[...],
                preferred_element_type=jnp.float32) + bv_ref[...]

    # scores = Q @ K.T / sqrt(hidden_dim)  (contract on the hidden axis, no explicit transpose)
    scale = 1.0 / math.sqrt(float(hidden_dim))
    s = lax.dot_general(q_sc[...], k.astype(jnp.bfloat16),
                        (((1,), (1,)), ((), ())),
                        preferred_element_type=jnp.float32) * scale  # (tile_q, tile_k) f32

    # Mask key columns introduced by padding n2 up to a multiple of tile_k.
    if n2 % tile_k != 0:
        col = kv * tile_k + lax.broadcasted_iota(jnp.int32, s.shape, 1)
        s = jnp.where(col < n2, s, -jnp.inf)

    # Online softmax accumulation (numerically stable, f32).
    m_prev = m_sc[...]
    m_new = jnp.maximum(m_prev, jnp.max(s, axis=-1, keepdims=True))
    alpha = jnp.exp(m_prev - m_new)
    p = jnp.exp(s - m_new)
    l_sc[...] = alpha * l_sc[...] + jnp.sum(p, axis=-1, keepdims=True)
    acc_sc[...] = alpha * acc_sc[...] + jnp.dot(
        p.astype(jnp.bfloat16), v.astype(jnp.bfloat16),
        preferred_element_type=jnp.float32)
    m_sc[...] = m_new

    @pl.when(kv == last_kv)
    def _finalize():
        # attn_output = softmax(scores) @ V   (EUP reciprocal for the denominator)
        x = acc_sc[...] * pl.reciprocal(l_sc[...], approx=True)

        # fc head: (num_layers - 1) x [Linear(H,H) + ReLU]  (static -> fully unrolled)
        for i in range(num_hidden_layers):
            x = jnp.dot(x.astype(jnp.bfloat16), wh_ref[i],
                        preferred_element_type=jnp.float32) + bh_ref[i]
            x = jnp.maximum(x, 0.0)  # activation_fn = ReLU

        # Final Linear(H, 1) + Sigmoid, produced as a lane-dense (1, tile_q) row.
        logit = lax.dot_general(wo_ref[...], x.astype(jnp.bfloat16),
                                (((1,), (1,)), ((), ())),
                                preferred_element_type=jnp.float32) + bo_ref[...]
        pred_ref[...] = jax.nn.sigmoid(logit).astype(pred_ref.dtype)


def ffnn_attn_forward(molecule1, molecule2, params, *, tile_q=128, tile_k=128):
    """Returns (pred_prob_ddi, embed_1, embed_2) matching FFNNAttn.forward."""
    n1, e = molecule1.shape
    n2, _ = molecule2.shape
    h = params["wq"].shape[1]
    nh = params["wh"].shape[0]

    hp = _round_up(h, 128)          # lane-pad hidden dim
    n1p = _round_up(n1, tile_q)
    n2p = _round_up(n2, tile_k)
    num_q = n1p // tile_q
    num_k = n2p // tile_k

    def pad2(x, r, c):
        return jnp.pad(x, ((0, r - x.shape[0]), (0, c - x.shape[1])))

    # Pad (zeros) and cast matmul operands to bf16; biases stay f32.
    m1 = pad2(molecule1, n1p, e).astype(jnp.bfloat16)
    m2 = pad2(molecule2, n2p, e).astype(jnp.bfloat16)
    wq = pad2(params["wq"], e, hp).astype(jnp.bfloat16)
    wk = pad2(params["wk"], e, hp).astype(jnp.bfloat16)
    wv = pad2(params["wv"], e, hp).astype(jnp.bfloat16)
    bq = pad2(params["bq"], 1, hp)
    bk = pad2(params["bk"], 1, hp)
    bv = pad2(params["bv"], 1, hp)
    wh = jnp.pad(params["wh"], ((0, 0), (0, hp - h), (0, hp - h))).astype(jnp.bfloat16)
    bh = jnp.pad(params["bh"], ((0, 0), (0, 0), (0, hp - h)))
    wo = pad2(params["wo"].T, 1, hp).astype(jnp.bfloat16)   # [1, hp] row
    bo = params["bo"]                                        # [1, 1]

    kernel = functools.partial(
        _ffnn_attn_kernel,
        num_hidden_layers=nh, hidden_dim=h, n2=n2, tile_k=tile_k)

    const2 = lambda i, k: (0, 0)
    const3 = lambda i, k: (0, 0, 0)

    grid_spec = pltpu.PrefetchScalarGridSpec(
        num_scalar_prefetch=0,
        grid=(num_q, num_k),
        in_specs=[
            pl.BlockSpec((tile_q, e), lambda i, k: (i, 0)),   # molecule1 row tile
            pl.BlockSpec((tile_k, e), lambda i, k: (k, 0)),   # molecule2 row tile
            pl.BlockSpec((e, hp), const2),                    # wq (resident)
            pl.BlockSpec((1, hp), const2),                    # bq
            pl.BlockSpec((e, hp), const2),                    # wk
            pl.BlockSpec((1, hp), const2),                    # bk
            pl.BlockSpec((e, hp), const2),                    # wv
            pl.BlockSpec((1, hp), const2),                    # bv
            pl.BlockSpec((nh, hp, hp), const3),               # hidden-layer weights
            pl.BlockSpec((nh, 1, hp), const3),                # hidden-layer biases
            pl.BlockSpec((1, hp), const2),                    # output row weight
            pl.BlockSpec((1, 1), const2),                     # output bias
        ],
        out_specs=pl.BlockSpec((1, tile_q), lambda i, k: (0, i)),
        scratch_shapes=[
            pltpu.VMEM((tile_q, hp), jnp.bfloat16),   # Q tile (resident over kv axis)
            pltpu.VMEM((tile_q, 1), jnp.float32),     # running max
            pltpu.VMEM((tile_q, 1), jnp.float32),     # running softmax denom
            pltpu.VMEM((tile_q, hp), jnp.float32),    # attention-output accumulator
        ],
    )

    pred_padded = pl.pallas_call(
        kernel,
        out_shape=jax.ShapeDtypeStruct((1, n1p), jnp.float32),
        grid_spec=grid_spec,
        compiler_params=pltpu.CompilerParams(
            dimension_semantics=("parallel", "arbitrary")),
    )(m1, m2, wq, bq, wk, bk, wv, bv, wh, bh, wo, bo)

    pred = pred_padded[0, :n1].reshape(n1, 1)
    # TODO(synk): `gnn` is an external module injected via FFNNAttn.__init__ (architecture
    # unknown here); modeled as identity, so embed_i == molecule_i (returned without a copy).
    return pred, molecule1, molecule2


def _init_params(key, embed_dim, hidden_dim, num_layers):
    """Deterministic synthetic weights (weights stored as [in, out])."""
    ks = jax.random.split(key, 8)
    s_in = 1.0 / jnp.sqrt(jnp.float32(embed_dim))
    s_h = 1.0 / jnp.sqrt(jnp.float32(hidden_dim))
    nh = num_layers - 1
    return {
        "wq": jax.random.uniform(ks[0], (embed_dim, hidden_dim), jnp.float32, -s_in, s_in),
        "bq": jax.random.uniform(ks[1], (1, hidden_dim), jnp.float32, -s_in, s_in),
        "wk": jax.random.uniform(ks[2], (embed_dim, hidden_dim), jnp.float32, -s_in, s_in),
        "bk": jax.random.uniform(ks[3], (1, hidden_dim), jnp.float32, -s_in, s_in),
        "wv": jax.random.uniform(ks[4], (embed_dim, hidden_dim), jnp.float32, -s_in, s_in),
        "bv": jax.random.uniform(ks[5], (1, hidden_dim), jnp.float32, -s_in, s_in),
        "wh": jax.random.uniform(ks[6], (nh, hidden_dim, hidden_dim), jnp.float32, -s_h, s_h),
        "bh": jax.random.uniform(ks[7], (nh, 1, hidden_dim), jnp.float32, -s_h, s_h),
        "wo": jax.random.uniform(ks[0], (hidden_dim, 1), jnp.float32, -s_h, s_h),
        "bo": jax.random.uniform(ks[1], (1, 1), jnp.float32, -s_h, s_h),
    }


def _reference_forward(m1, m2, p):
    """Pure-JAX f32 reference matching the PyTorch forward semantics."""
    e1, e2 = m1, m2  # gnn == identity
    q = e1 @ p["wq"] + p["bq"]
    k = e2 @ p["wk"] + p["bk"]
    v = e2 @ p["wv"] + p["bv"]
    h = p["wq"].shape[1]
    scores = (q @ k.T) / jnp.sqrt(jnp.float32(h))
    probs = jax.nn.softmax(scores, axis=-1)
    x = probs @ v
    for i in range(p["wh"].shape[0]):
        x = jnp.maximum(x @ p["wh"][i] + p["bh"][i], 0.0)
    pred = jax.nn.sigmoid(x @ p["wo"] + p["bo"])
    return pred, e1, e2


if __name__ == "__main__":
    EMBED_DIM, HIDDEN_DIM, NUM_LAYERS = 16, 32, 3
    key = jax.random.PRNGKey(0)

    def run_case(n1, n2, case_key):
        k1, k2, kp = jax.random.split(case_key, 3)
        m1 = jax.random.normal(k1, (n1, EMBED_DIM), jnp.float32)
        m2 = jax.random.normal(k2, (n2, EMBED_DIM), jnp.float32)
        params = _init_params(kp, EMBED_DIM, HIDDEN_DIM, NUM_LAYERS)

        pred, e1, e2 = ffnn_attn_forward(m1, m2, params)
        jax.block_until_ready((pred, e1, e2))

        pred_ref, e1_ref, e2_ref = _reference_forward(m1, m2, params)
        assert pred.shape == (n1, 1)
        # bf16 MXU operands + approx reciprocal -> relaxed tolerance vs f32 reference.
        assert jnp.allclose(pred, pred_ref, atol=3e-2, rtol=3e-2), float(
            jnp.max(jnp.abs(pred - pred_ref)))
        assert jnp.allclose(e1, e1_ref) and jnp.allclose(e2, e2_ref)

    # Small shapes consistent with the module (single-tile grid).
    run_case(8, 8, jax.random.fold_in(key, 0))
    # Larger case exercising multi-tile grid, online softmax and padding masks.
    run_case(300, 200, jax.random.fold_in(key, 1))

    print("KERNEL_OK")
</pallas_src>

<mosaic_0001>
module attributes {stable_mosaic.version = 11 : i64} {
  func.func @_ffnn_attn_kernel(%arg0: i32, %arg1: i32, %arg2: memref<128x16xbf16, #tpu.memory_space<vmem>>, %arg3: memref<128x16xbf16, #tpu.memory_space<vmem>>, %arg4: memref<16x128xbf16, #tpu.memory_space<vmem>>, %arg5: memref<1x128xf32, #tpu.memory_space<vmem>>, %arg6: memref<16x128xbf16, #tpu.memory_space<vmem>>, %arg7: memref<1x128xf32, #tpu.memory_space<vmem>>, %arg8: memref<16x128xbf16, #tpu.memory_space<vmem>>, %arg9: memref<1x128xf32, #tpu.memory_space<vmem>>, %arg10: memref<2x128x128xbf16, #tpu.memory_space<vmem>>, %arg11: memref<2x1x128xf32, #tpu.memory_space<vmem>>, %arg12: memref<1x128xbf16, #tpu.memory_space<vmem>>, %arg13: memref<1x1xf32, #tpu.memory_space<vmem>>, %arg14: memref<1x128xf32, #tpu.memory_space<vmem>>, %arg15: memref<128x128xbf16, #tpu.memory_space<vmem>>, %arg16: memref<128x1xf32, #tpu.memory_space<vmem>>, %arg17: memref<128x1xf32, #tpu.memory_space<vmem>>, %arg18: memref<128x128xf32, #tpu.memory_space<vmem>>) attributes {dimension_semantics = [#tpu.dimension_semantics<parallel>, #tpu.dimension_semantics<arbitrary>], iteration_bounds = array<i64: 1, 1>, scalar_prefetch = 0 : i64, scratch_operands = 4 : i64, tpu.core_type = #tpu.core_type<tc>, window_params = [{transform_indices = @transform_0, window_bounds = array<i64: 128, 16>}, {transform_indices = @transform_1, window_bounds = array<i64: 128, 16>}, {pipeline_mode = #tpu.pipeline_mode<synchronous>, transform_indices = @transform_2, window_bounds = array<i64: 16, 128>}, {pipeline_mode = #tpu.pipeline_mode<synchronous>, transform_indices = @transform_3, window_bounds = array<i64: 1, 128>}, {pipeline_mode = #tpu.pipeline_mode<synchronous>, transform_indices = @transform_4, window_bounds = array<i64: 16, 128>}, {pipeline_mode = #tpu.pipeline_mode<synchronous>, transform_indices = @transform_5, window_bounds = array<i64: 1, 128>}, {pipeline_mode = #tpu.pipeline_mode<synchronous>, transform_indices = @transform_6, window_bounds = array<i64: 16, 128>}, {pipeline_mode = #tpu.pipeline_mode<synchronous>, transform_indices = @transform_7, window_bounds = array<i64: 1, 128>}, {pipeline_mode = #tpu.pipeline_mode<synchronous>, transform_indices = @transform_8, window_bounds = array<i64: 2, 128, 128>}, {pipeline_mode = #tpu.pipeline_mode<synchronous>, transform_indices = @transform_9, window_bounds = array<i64: 2, 1, 128>}, {pipeline_mode = #tpu.pipeline_mode<synchronous>, transform_indices = @transform_10, window_bounds = array<i64: 1, 128>}, {pipeline_mode = #tpu.pipeline_mode<synchronous>, transform_indices = @transform_11, window_bounds = array<i64: 1, 1>}, {transform_indices = @transform_12, window_bounds = array<i64: 1, 128>}]} {
    %c0_i32 = arith.constant 0 : i32
    %0 = arith.cmpi eq, %arg1, %c0_i32 : i32
    %1 = arith.extui %0 : i1 to i32
    %c0_i32_0 = arith.constant 0 : i32
    %2 = arith.cmpi ne, %1, %c0_i32_0 : i32
    scf.if %2 {
      %c0_35 = arith.constant 0 : index
      %c0_36 = arith.constant 0 : index
      %55 = vector.load %arg2[%c0_35, %c0_36] : memref<128x16xbf16, #tpu.memory_space<vmem>>, vector<128x16xbf16>
      %c0_37 = arith.constant 0 : index
      %c0_38 = arith.constant 0 : index
      %56 = vector.load %arg4[%c0_37, %c0_38] : memref<16x128xbf16, #tpu.memory_space<vmem>>, vector<16x128xbf16>
      %cst_39 = arith.constant dense<0.000000e+00> : vector<128x128xf32>
      %57 = tpu.matmul %55, %56, %cst_39 {dimension_numbers = #tpu.dot_dimension_numbers<[1], [0], [0], [1], [0, 0, 1, 1], [], []>} : vector<128x16xbf16>, vector<16x128xbf16>, vector<128x128xf32> -> vector<128x128xf32>
      %c0_40 = arith.constant 0 : index
      %c0_41 = arith.constant 0 : index
      %58 = vector.load %arg5[%c0_40, %c0_41] : memref<1x128xf32, #tpu.memory_space<vmem>>, vector<1x128xf32>
      %59 = vector.broadcast %58 : vector<1x128xf32> to vector<128x128xf32>
      %60 = arith.addf %57, %59 : vector<128x128xf32>
      %61 = arith.truncf %60 : vector<128x128xf32> to vector<128x128xbf16>
      %c0_42 = arith.constant 0 : index
      %c0_43 = arith.constant 0 : index
      %62 = vector.load %arg15[%c0_42, %c0_43] : memref<128x128xbf16, #tpu.memory_space<vmem>>, vector<128x128xbf16>
      tpu.vector_store %arg15[%c0_42, %c0_43], %61 {strides = array<i32>} : memref<128x128xbf16, #tpu.memory_space<vmem>>, vector<128x128xbf16>,
      %cst_44 = arith.constant 0xFF800000 : f32
      %63 = vector.broadcast %cst_44 : f32 to vector<128x1xf32>
      %c0_45 = arith.constant 0 : index
      %c0_46 = arith.constant 0 : index
      %64 = vector.load %arg16[%c0_45, %c0_46] : memref<128x1xf32, #tpu.memory_space<vmem>>, vector<128x1xf32>
      tpu.vector_store %arg16[%c0_45, %c0_46], %63 {strides = array<i32>} : memref<128x1xf32, #tpu.memory_space<vmem>>, vector<128x1xf32>,
      %cst_47 = arith.constant 0.000000e+00 : f32
      %65 = vector.broadcast %cst_47 : f32 to vector<128x1xf32>
      %c0_48 = arith.constant 0 : index
      %c0_49 = arith.constant 0 : index
      %66 = vector.load %arg17[%c0_48, %c0_49] : memref<128x1xf32, #tpu.memory_space<vmem>>, vector<128x1xf32>
      tpu.vector_store %arg17[%c0_48, %c0_49], %65 {strides = array<i32>} : memref<128x1xf32, #tpu.memory_space<vmem>>, vector<128x1xf32>,
      %cst_50 = arith.constant 0.000000e+00 : f32
      %67 = vector.broadcast %cst_50 : f32 to vector<128x128xf32>
      %c0_51 = arith.constant 0 : index
      %c0_52 = arith.constant 0 : index
      %68 = vector.load %arg18[%c0_51, %c0_52] : memref<128x128xf32, #tpu.memory_space<vmem>>, vector<128x128xf32>
      tpu.vector_store %arg18[%c0_51, %c0_52], %67 {strides = array<i32>} : memref<128x128xf32, #tpu.memory_space<vmem>>, vector<128x128xf32>,
    } else {
    }
    %c0 = arith.constant 0 : index
    %c0_1 = arith.constant 0 : index
    %3 = vector.load %arg3[%c0, %c0_1] : memref<128x16xbf16, #tpu.memory_space<vmem>>, vector<128x16xbf16>
    %c0_2 = arith.constant 0 : index
    %c0_3 = arith.constant 0 : index
    %4 = vector.load %arg6[%c0_2, %c0_3] : memref<16x128xbf16, #tpu.memory_space<vmem>>, vector<16x128xbf16>
    %cst = arith.constant dense<0.000000e+00> : vector<128x128xf32>
    %5 = tpu.matmul %3, %4, %cst {dimension_numbers = #tpu.dot_dimension_numbers<[1], [0], [0], [1], [0, 0, 1, 1], [], []>} : vector<128x16xbf16>, vector<16x128xbf16>, vector<128x128xf32> -> vector<128x128xf32>
    %c0_4 = arith.constant 0 : index
    %c0_5 = arith.constant 0 : index
    %6 = vector.load %arg7[%c0_4, %c0_5] : memref<1x128xf32, #tpu.memory_space<vmem>>, vector<1x128xf32>
    %7 = vector.broadcast %6 : vector<1x128xf32> to vector<128x128xf32>
    %8 = arith.addf %5, %7 : vector<128x128xf32>
    %c0_6 = arith.constant 0 : index
    %c0_7 = arith.constant 0 : index
    %9 = vector.load %arg3[%c0_6, %c0_7] : memref<128x16xbf16, #tpu.memory_space<vmem>>, vector<128x16xbf16>
    %c0_8 = arith.constant 0 : index
    %c0_9 = arith.constant 0 : index
    %10 = vector.load %arg8[%c0_8, %c0_9] : memref<16x128xbf16, #tpu.memory_space<vmem>>, vector<16x128xbf16>
    %cst_10 = arith.constant dense<0.000000e+00> : vector<128x128xf32>
    %11 = tpu.matmul %9, %10, %cst_10 {dimension_numbers = #tpu.dot_dimension_numbers<[1], [0], [0], [1], [0, 0, 1, 1], [], []>} : vector<128x16xbf16>, vector<16x128xbf16>, vector<128x128xf32> -> vector<128x128xf32>
    %c0_11 = arith.constant 0 : index
    %c0_12 = arith.constant 0 : index
    %12 = vector.load %arg9[%c0_11, %c0_12] : memref<1x128xf32, #tpu.memory_space<vmem>>, vector<1x128xf32>
    %13 = vector.broadcast %12 : vector<1x128xf32> to vector<128x128xf32>
    %14 = arith.addf %11, %13 : vector<128x128xf32>
    %c0_13 = arith.constant 0 : index
    %c0_14 = arith.constant 0 : index
    %15 = vector.load %arg15[%c0_13, %c0_14] : memref<128x128xbf16, #tpu.memory_space<vmem>>, vector<128x128xbf16>
    %16 = arith.truncf %8 : vector<128x128xf32> to vector<128x128xbf16>
    %cst_15 = arith.constant dense<0.000000e+00> : vector<128x128xf32>
    %17 = tpu.matmul %15, %16, %cst_15 {dimension_numbers = #tpu.dot_dimension_numbers<[1], [1], [0], [0], [0, 0, 1, 0], [], []>} : vector<128x128xbf16>, vector<128x128xbf16>, vector<128x128xf32> -> vector<128x128xf32>
    %cst_16 = arith.constant 0.176776692 : f32
    %18 = vector.broadcast %cst_16 : f32 to vector<128x128xf32>
    %19 = arith.mulf %17, %18 : vector<128x128xf32>
    %c128_i32 = arith.constant 128 : i32
    %20 = arith.muli %arg1, %c128_i32 : i32
    %21 = tpu.iota {dimensions = array<i32: 1>} : vector<128x128xi32>
    %22 = vector.broadcast %20 : i32 to vector<128x128xi32>
    %23 = arith.addi %22, %21 : vector<128x128xi32>
    %c8_i32 = arith.constant 8 : i32
    %24 = vector.broadcast %c8_i32 : i32 to vector<128x128xi32>
    %25 = arith.cmpi slt, %23, %24 : vector<128x128xi32>
    %cst_17 = arith.constant 0xFF800000 : f32
    %26 = vector.broadcast %cst_17 : f32 to vector<128x128xf32>
    %27 = arith.select %25, %19, %26 : vector<128x128xi1>, vector<128x128xf32>
    %c0_18 = arith.constant 0 : index
    %c0_19 = arith.constant 0 : index
    %28 = vector.load %arg16[%c0_18, %c0_19] : memref<128x1xf32, #tpu.memory_space<vmem>>, vector<128x1xf32>
    %cst_20 = arith.constant dense<0xFF800000> : vector<128xf32>
    %29 = vector.multi_reduction <maximumf>, %27, %cst_20 [1] : vector<128x128xf32> to vector<128xf32>
    %30 = vector.shape_cast %29 : vector<128xf32> to vector<128x1xf32>
    %31 = arith.maximumf %28, %30 : vector<128x1xf32>
    %32 = arith.subf %28, %31 : vector<128x1xf32>
    %33 = math.exp %32 : vector<128x1xf32>
    %34 = vector.broadcast %31 : vector<128x1xf32> to vector<128x128xf32>
    %35 = arith.subf %27, %34 : vector<128x128xf32>
    %36 = math.exp %35 : vector<128x128xf32>
    %c0_21 = arith.constant 0 : index
    %c0_22 = arith.constant 0 : index
    %37 = vector.load %arg17[%c0_21, %c0_22] : memref<128x1xf32, #tpu.memory_space<vmem>>, vector<128x1xf32>
    %38 = arith.mulf %33, %37 : vector<128x1xf32>
    %cst_23 = arith.constant dense<0.000000e+00> : vector<128xf32>
    %39 = vector.multi_reduction <add>, %36, %cst_23 [1] : vector<128x128xf32> to vector<128xf32>
    %40 = vector.shape_cast %39 : vector<128xf32> to vector<128x1xf32>
    %41 = arith.addf %38, %40 : vector<128x1xf32>
    %c0_24 = arith.constant 0 : index
    %c0_25 = arith.constant 0 : index
    %42 = vector.load %arg17[%c0_24, %c0_25] : memref<128x1xf32, #tpu.memory_space<vmem>>, vector<128x1xf32>
    tpu.vector_store %arg17[%c0_24, %c0_25], %41 {strides = array<i32>} : memref<128x1xf32, #tpu.memory_space<vmem>>, vector<128x1xf32>,
    %c0_26 = arith.constant 0 : index
    %c0_27 = arith.constant 0 : index
    %43 = vector.load %arg18[%c0_26, %c0_27] : memref<128x128xf32, #tpu.memory_space<vmem>>, vector<128x128xf32>
    %44 = vector.broadcast %33 : vector<128x1xf32> to vector<128x128xf32>
    %45 = arith.mulf %44, %43 : vector<128x128xf32>
    %46 = arith.truncf %36 : vector<128x128xf32> to vector<128x128xbf16>
    %47 = arith.truncf %14 : vector<128x128xf32> to vector<128x128xbf16>
    %cst_28 = arith.constant dense<0.000000e+00> : vector<128x128xf32>
    %48 = tpu.matmul %46, %47, %cst_28 {dimension_numbers = #tpu.dot_dimension_numbers<[1], [0], [0], [1], [0, 0, 1, 1], [], []>} : vector<128x128xbf16>, vector<128x128xbf16>, vector<128x128xf32> -> vector<128x128xf32>
    %49 = arith.addf %45, %48 : vector<128x128xf32>
    %c0_29 = arith.constant 0 : index
    %c0_30 = arith.constant 0 : index
    %50 = vector.load %arg18[%c0_29, %c0_30] : memref<128x128xf32, #tpu.memory_space<vmem>>, vector<128x128xf32>
    tpu.vector_store %arg18[%c0_29, %c0_30], %49 {strides = array<i32>} : memref<128x128xf32, #tpu.memory_space<vmem>>, vector<128x128xf32>,
    %c0_31 = arith.constant 0 : index
    %c0_32 = arith.constant 0 : index
    %51 = vector.load %arg16[%c0_31, %c0_32] : memref<128x1xf32, #tpu.memory_space<vmem>>, vector<128x1xf32>
    tpu.vector_store %arg16[%c0_31, %c0_32], %31 {strides = array<i32>} : memref<128x1xf32, #tpu.memory_space<vmem>>, vector<128x1xf32>,
    %c0_i32_33 = arith.constant 0 : i32
    %52 = arith.cmpi eq, %arg1, %c0_i32_33 : i32
    %53 = arith.extui %52 : i1 to i32
    %c0_i32_34 = arith.constant 0 : i32
    %54 = arith.cmpi ne, %53, %c0_i32_34 : i32
    scf.if %54 {
      %c0_35 = arith.constant 0 : index
      %c0_36 = arith.constant 0 : index
      %55 = vector.load %arg18[%c0_35, %c0_36] : memref<128x128xf32, #tpu.memory_space<vmem>>, vector<128x128xf32>
      %c0_37 = arith.constant 0 : index
      %c0_38 = arith.constant 0 : index
      %56 = vector.load %arg17[%c0_37, %c0_38] : memref<128x1xf32, #tpu.memory_space<vmem>>, vector<128x1xf32>
      %57 = tpu.reciprocal %56 {approx = true} : vector<128x1xf32> -> vector<128x1xf32>
      %58 = vector.broadcast %57 : vector<128x1xf32> to vector<128x128xf32>
      %59 = arith.mulf %55, %58 : vector<128x128xf32>
      %60 = arith.truncf %59 : vector<128x128xf32> to vector<128x128xbf16>
      %c0_39 = arith.constant 0 : index
      %c0_40 = arith.constant 0 : index
      %c0_41 = arith.constant 0 : index
      %61 = vector.load %arg10[%c0_39, %c0_40, %c0_41] : memref<2x128x128xbf16, #tpu.memory_space<vmem>>, vector<1x128x128xbf16>
      %62 = vector.shape_cast %61 : vector<1x128x128xbf16> to vector<128x128xbf16>
      %cst_42 = arith.constant dense<0.000000e+00> : vector<128x128xf32>
      %63 = tpu.matmul %60, %62, %cst_42 {dimension_numbers = #tpu.dot_dimension_numbers<[1], [0], [0], [1], [0, 0, 1, 1], [], []>} : vector<128x128xbf16>, vector<128x128xbf16>, vector<128x128xf32> -> vector<128x128xf32>
      %c0_43 = arith.constant 0 : index
      %c0_44 = arith.constant 0 : index
      %c0_45 = arith.constant 0 : index
      %64 = vector.load %arg11[%c0_43, %c0_44, %c0_45] : memref<2x1x128xf32, #tpu.memory_space<vmem>>, vector<1x1x128xf32>
      %65 = vector.shape_cast %64 : vector<1x1x128xf32> to vector<1x128xf32>
      %66 = vector.broadcast %65 : vector<1x128xf32> to vector<128x128xf32>
      %67 = arith.addf %63, %66 : vector<128x128xf32>
      %cst_46 = arith.constant 0.000000e+00 : f32
      %68 = vector.broadcast %cst_46 : f32 to vector<128x128xf32>
      %69 = arith.maximumf %67, %68 : vector<128x128xf32>
      %70 = arith.truncf %69 : vector<128x128xf32> to vector<128x128xbf16>
      %c1 = arith.constant 1 : index
      %c0_47 = arith.constant 0 : index
      %c0_48 = arith.constant 0 : index
      %71 = vector.load %arg10[%c1, %c0_47, %c0_48] : memref<2x128x128xbf16, #tpu.memory_space<vmem>>, vector<1x128x128xbf16>
      %72 = vector.shape_cast %71 : vector<1x128x128xbf16> to vector<128x128xbf16>
      %cst_49 = arith.constant dense<0.000000e+00> : vector<128x128xf32>
      %73 = tpu.matmul %70, %72, %cst_49 {dimension_numbers = #tpu.dot_dimension_numbers<[1], [0], [0], [1], [0, 0, 1, 1], [], []>} : vector<128x128xbf16>, vector<128x128xbf16>, vector<128x128xf32> -> vector<128x128xf32>
      %c1_50 = arith.constant 1 : index
      %c0_51 = arith.constant 0 : index
      %c0_52 = arith.constant 0 : index
      %74 = vector.load %arg11[%c1_50, %c0_51, %c0_52] : memref<2x1x128xf32, #tpu.memory_space<vmem>>, vector<1x1x128xf32>
      %75 = vector.shape_cast %74 : vector<1x1x128xf32> to vector<1x128xf32>
      %76 = vector.broadcast %75 : vector<1x128xf32> to vector<128x128xf32>
      %77 = arith.addf %73, %76 : vector<128x128xf32>
      %cst_53 = arith.constant 0.000000e+00 : f32
      %78 = vector.broadcast %cst_53 : f32 to vector<128x128xf32>
      %79 = arith.maximumf %77, %78 : vector<128x128xf32>
      %c0_54 = arith.constant 0 : index
      %c0_55 = arith.constant 0 : index
      %80 = vector.load %arg12[%c0_54, %c0_55] : memref<1x128xbf16, #tpu.memory_space<vmem>>, vector<1x128xbf16>
      %81 = arith.truncf %79 : vector<128x128xf32> to vector<128x128xbf16>
      %cst_56 = arith.constant dense<0.000000e+00> : vector<1x128xf32>
      %82 = tpu.matmul %80, %81, %cst_56 {dimension_numbers = #tpu.dot_dimension_numbers<[1], [1], [0], [0], [0, 0, 1, 0], [], []>} : vector<1x128xbf16>, vector<128x128xbf16>, vector<1x128xf32> -> vector<1x128xf32>
      %c0_57 = arith.constant 0 : index
      %c0_58 = arith.constant 0 : index
      %83 = vector.load %arg13[%c0_57, %c0_58] : memref<1x1xf32, #tpu.memory_space<vmem>>, vector<1x1xf32>
      %84 = vector.broadcast %83 : vector<1x1xf32> to vector<1x128xf32>
      %85 = arith.addf %82, %84 : vector<1x128xf32>
      %86 = arith.negf %85 : vector<1x128xf32>
      %87 = math.exp %86 : vector<1x128xf32>
      %cst_59 = arith.constant 1.000000e+00 : f32
      %88 = vector.broadcast %cst_59 : f32 to vector<1x128xf32>
      %89 = arith.addf %88, %87 : vector<1x128xf32>
      %90 = arith.divf %88, %89 : vector<1x128xf32>
      %c0_60 = arith.constant 0 : index
      %c0_61 = arith.constant 0 : index
      %91 = vector.load %arg14[%c0_60, %c0_61] : memref<1x128xf32, #tpu.memory_space<vmem>>, vector<1x128xf32>
      tpu.vector_store %arg14[%c0_60, %c0_61], %90 {strides = array<i32>} : memref<1x128xf32, #tpu.memory_space<vmem>>, vector<1x128xf32>,
    } else {
    }
    return
  }
  func.func @transform_0(%arg0: i32, %arg1: i32) -> (i32, i32) {
    %c0_i32 = arith.constant 0 : i32
    %c0_i32_0 = arith.constant 0 : i32
    return %arg0, %c0_i32 : i32, i32
  }
  func.func @transform_1(%arg0: i32, %arg1: i32) -> (i32, i32) {
    %c0_i32 = arith.constant 0 : i32
    %c0_i32_0 = arith.constant 0 : i32
    return %arg1, %c0_i32 : i32, i32
  }
  func.func @transform_2(%arg0: i32, %arg1: i32) -> (i32, i32) {
    %c0_i32 = arith.constant 0 : i32
    %c0_i32_0 = arith.constant 0 : i32
    %c0_i32_1 = arith.constant 0 : i32
    return %c0_i32, %c0_i32_0 : i32, i32
  }
  func.func @transform_3(%arg0: i32, %arg1: i32) -> (i32, i32) {
    %c0_i32 = arith.constant 0 : i32
    %c0_i32_0 = arith.constant 0 : i32
    %c0_i32_1 = arith.constant 0 : i32
    return %c0_i32, %c0_i32_0 : i32, i32
  }
  func.func @transform_4(%arg0: i32, %arg1: i32) -> (i32, i32) {
    %c0_i32 = arith.constant 0 : i32
    %c0_i32_0 = arith.constant 0 : i32
    %c0_i32_1 = arith.constant 0 : i32
    return %c0_i32, %c0_i32_0 : i32, i32
  }
  func.func @transform_5(%arg0: i32, %arg1: i32) -> (i32, i32) {
    %c0_i32 = arith.constant 0 : i32
    %c0_i32_0 = arith.constant 0 : i32
    %c0_i32_1 = arith.constant 0 : i32
    return %c0_i32, %c0_i32_0 : i32, i32
  }
  func.func @transform_6(%arg0: i32, %arg1: i32) -> (i32, i32) {
    %c0_i32 = arith.constant 0 : i32
    %c0_i32_0 = arith.constant 0 : i32
    %c0_i32_1 = arith.constant 0 : i32
    return %c0_i32, %c0_i32_0 : i32, i32
  }
  func.func @transform_7(%arg0: i32, %arg1: i32) -> (i32, i32) {
    %c0_i32 = arith.constant 0 : i32
    %c0_i32_0 = arith.constant 0 : i32
    %c0_i32_1 = arith.constant 0 : i32
    return %c0_i32, %c0_i32_0 : i32, i32
  }
  func.func @transform_8(%arg0: i32, %arg1: i32) -> (i32, i32, i32) {
    %c0_i32 = arith.constant 0 : i32
    %c0_i32_0 = arith.constant 0 : i32
    %c0_i32_1 = arith.constant 0 : i32
    %c0_i32_2 = arith.constant 0 : i32
    return %c0_i32, %c0_i32_0, %c0_i32_1 : i32, i32, i32
  }
  func.func @transform_9(%arg0: i32, %arg1: i32) -> (i32, i32, i32) {
    %c0_i32 = arith.constant 0 : i32
    %c0_i32_0 = arith.constant 0 : i32
    %c0_i32_1 = arith.constant 0 : i32
    %c0_i32_2 = arith.constant 0 : i32
    return %c0_i32, %c0_i32_0, %c0_i32_1 : i32, i32, i32
  }
  func.func @transform_10(%arg0: i32, %arg1: i32) -> (i32, i32) {
    %c0_i32 = arith.constant 0 : i32
    %c0_i32_0 = arith.constant 0 : i32
    %c0_i32_1 = arith.constant 0 : i32
    return %c0_i32, %c0_i32_0 : i32, i32
  }
  func.func @transform_11(%arg0: i32, %arg1: i32) -> (i32, i32) {
    %c0_i32 = arith.constant 0 : i32
    %c0_i32_0 = arith.constant 0 : i32
    %c0_i32_1 = arith.constant 0 : i32
    return %c0_i32, %c0_i32_0 : i32, i32
  }
  func.func @transform_12(%arg0: i32, %arg1: i32) -> (i32, i32) {
    %c0_i32 = arith.constant 0 : i32
    %c0_i32_0 = arith.constant 0 : i32
    return %c0_i32, %arg0 : i32, i32
  }
}

</mosaic_0001>

<bundles_post_ra>
// kernel: tpu_custom_call.1
= control target key start
LH: loop header
LB: loop body
LE: loop exit
PB: predicated region body
PF: predicated region fallthrough
CT: control target
= control target key end

     0   :  { %s3323_s0 = inlined_call_operand.vmem [shape: bf16[128,16], index: 0, kind: input, shape index: {}]   ;;  %s3324_s1 = inlined_call_operand.vmem [shape: bf16[128,16], index: 1, kind: input, shape index: {}]   ;;  %s3325_s2 = inlined_call_operand.vmem [shape: bf16[16,128], index: 2, kind: input, shape index: {}]   ;;  %s3326_s3 = inlined_call_operand.vmem [shape: f32[1,128], index: 3, kind: input, shape index: {}]   ;;  %s3327_s4 = inlined_call_operand.vmem [shape: bf16[16,128], index: 4, kind: input, shape index: {}]   ;;  %s3328_s5 = inlined_call_operand.vmem [shape: f32[1,128], index: 5, kind: input, shape index: {}]   ;;  %s3329_s6 = inlined_call_operand.vmem [shape: bf16[16,128], index: 6, kind: input, shape index: {}]   ;;  %s3330_s7 = inlined_call_operand.vmem [shape: f32[1,128], index: 7, kind: input, shape index: {}]   ;;  %s3331_s8 = inlined_call_operand.vmem [shape: bf16[2,128,128], index: 8, kind: input, shape index: {}]   ;;  %s3332_s9 = inlined_call_operand.vmem [shape: f32[2,1,128], index: 9, kind: input, shape index: {}]   ;;  %s3333_s10 = inlined_call_operand.vmem [shape: bf16[1,128], index: 10, kind: input, shape index: {}]   ;;  %s3334_s11 = inlined_call_operand.<no memory space> [shape: f32[1,1], index: 11, kind: input, shape index: {}]   ;;  %s3335_s12 = inlined_call_operand.hbm [shape: f32[1,128], index: 12, kind: output, shape index: {}]  }
   0x1   :  { %v17_v0 = vstv %s3334_s11 }
   0x2   :  { %18 = vst [vmem:[#allocation6] sm:$0x1] %v17_v0 }
   0x3   :  { %v2379_v1 = vld [vmem:[%s3325_s2] sm:$0xff]   ;;  %vm120_vm0 = vcmask 130048   ;;  %v2380_v2 = vld [vmem:[%s3323_s0 + $0x10] sm:$0xff]   ;;  %v2381_v3 = vld [vmem:[%s3323_s0 + $0x18] sm:$0xff]  }
   0x4   :  { %2370 = vmatprep.subr.bf16.mxu1 %v2379_v1  ;;  %2168 = vmatprep.subr.bf16.mxu0 %v2379_v1  ;;  %v2382_v4 = vld [vmem:[%s3327_s4] sm:$0xff]   ;;  %v2384_v6 = vld [vmem:[%s3323_s0 + $0x28] sm:$0xff]   ;;  %v2385_v7 = vld [vmem:[%s3323_s0 + $0x30] sm:$0xff]  }
   0x5   :  { %2371 = vmatpush3.bf16.msra.mxu1 %v2379_v1  ;;  %2174 = vmatprep.mubr.msk.bf16.mxu1 %vm120_vm0, %v2380_v2  ;;  %v2383_v5 = vld [vmem:[%s3323_s0 + $0x20] sm:$0xff]   ;;  %v2386_v8 = vld [vmem:[%s3323_s0 + $0x38] sm:$0xff]   ;;  %v2396_v10 = vld [vmem:[%s3323_s0 + $0x8] sm:$0xff]  }
   0x6   :  { %2169 = vmatpush3.bf16.msra.mxu0 %v2379_v1  ;;  %2186 = vmatprep.subr.bf16.mxu1 %v2382_v4  ;;  %v2395_v9 = vld [vmem:[%s3323_s0] sm:$0xff]   ;;  %v2657_v12 = vld [vmem:[%s3324_s1 + $0x8] sm:$0xff]   ;;  %v2662_v13 = vld [vmem:[%s3324_s1 + $0x10] sm:$0xff]  }
   0x7   :  { %v2387_v11 = vld [vmem:[%s3324_s1] sm:$0xff]   ;;  %2170 = vmatprep.mubr.msk.bf16.mxu0 %vm120_vm0, %v2395_v9 }
   0x8   :  { %2175 = vmatmul.mubr.msk.bf16.vlgmr.msra.gmra.mrb[0].mxu1 %vm120_vm0, %v2381_v3 }
   0x9   :  { %2187 = vmatpush3.bf16.msra.mxu1 %v2382_v4  ;;  %2178 = vmatprep.mubr.msk.bf16.mxu1 %vm120_vm0, %v2383_v5 }
   0xa   :  { %2171 = vmatmul.mubr.msk.bf16.vlgmr.msra.gmra.mrb[0].mxu0 %vm120_vm0, %v2396_v10 }
   0xb   :  { %2206 = vmatprep.mubr.msk.bf16.mxu0 %vm120_vm0, %v2387_v11 }
  0x10   :  { %2179 = vmatmul.mubr.msk.bf16.gmra.mrb[4].mxu1 %vm120_vm0, %v2384_v6 }
  0x11   :  { %2182 = vmatprep.mubr.msk.bf16.mxu1 %vm120_vm0, %v2385_v7 }
  0x18   :  { %2183 = vmatmul.mubr.msk.bf16.gmra.mrb[8].mxu1 %vm120_vm0, %v2386_v8 }
  0x19   :  { %2188 = vmatprep.mubr.msk.bf16.mxu1 %vm120_vm0, %v2387_v11 }
  0x1a   :  { %19 = vsyncpa [#allocation8], 0  ;;  %v2671_v14 = vld [vmem:[%s3324_s1 + $0x18] sm:$0xff]   ;;  %v2676_v15 = vld [vmem:[%s3324_s1 + $0x20] sm:$0xff]   ;;  %vm258_vm1 = vcmask 7168   ;;  %vm2541_vm3 = vmmov 0  }
  0x1b   :  { %v2685_v16 = vld [vmem:[%s3324_s1 + $0x28] sm:$0xff]   ;;  %v2690_v17 = vld [vmem:[%s3324_s1 + $0x30] sm:$0xff]   ;;  %v2699_v18 = vld [vmem:[%s3324_s1 + $0x38] sm:$0xff]   ;;  %s2542_s27 = smov [#allocation7]  }
  0x1c   :  { %v1986_v19 = vld [vmem:[%s3326_s3] ss:$0 sm:$0xff]  ;;  %s1978_s28 = sshll.u32 %s2542_s27, 4  ;;  %s1979_s28 = int_to_ptr.vmem [resolvable:$true] %s1978_s28 }
  0x1d   :  { %v2004_v61 = vld [vmem:[%s3328_s5] ss:$0 sm:$0xff]  ;;  %s2518_s11 = scalar_lea.vmem %s1979_s28, 32  ;;  %p2519_p1 = scmp.lt.s32.totalorder %s1979_s28, %s1979_s28 }
  0x20   :  { %2189 = vmatmul.mubr.msk.bf16.vlgmr.msra.gmra.mrb[12].mxu1 %vm120_vm0, %v2657_v12 }
  0x21   :  { %2192 = vmatprep.mubr.msk.bf16.mxu1 %vm120_vm0, %v2662_v13 }
  0x28   :  { %2193 = vmatmul.mubr.msk.bf16.gmra.mrb[16].mxu1 %vm120_vm0, %v2671_v14 }
  0x29   :  { %2196 = vmatprep.mubr.msk.bf16.mxu1 %vm120_vm0, %v2676_v15 }
  0x30   :  { %2197 = vmatmul.mubr.msk.bf16.gmra.mrb[20].mxu1 %vm120_vm0, %v2685_v16 }
  0x31   :  { %2200 = vmatprep.mubr.msk.bf16.mxu1 %vm120_vm0, %v2690_v17 }
  0x38   :  { %2201 = vmatmul.mubr.msk.bf16.gmra.mrb[24].mxu1 %vm120_vm0, %v2699_v18 }
  0xdb   :  { %v2176_v20 = vpop.f32.mrb[0].mxu1 }
  0xdc   :  { %v2706_v21 = vadd.f32 %v2176_v20, %v1986_v19  ;;  %v195_v22 = vpop.f32.mrb[1].mxu1 }
  0xdd   :  { %v2708_v23 = vadd.f32 %v1986_v19, %v195_v22  ;;  %v2177_v24 = vpop.f32.mrb[2].mxu1  ;;  %v2172_v39 = vpop.f32.mrb[0].mxu0 }
  0xde   :  { %v2710_v25 = vadd.f32 %v2177_v24, %v1986_v19  ;;  %v198_v26 = vpop.f32.mrb[3].mxu1  ;;  %v2730_v41 = vadd.f32 %v2172_v39, %v1986_v19  ;;  %v179_v42 = vpop.f32.mrb[1].mxu0 }
  0xdf   :  { %v2712_v27 = vadd.f32 %v1986_v19, %v198_v26  ;;  %v180_v43 = vadd.f32 %v1986_v19, %v179_v42  ;;  %v2173_v44 = vpop.f32.mrb[2].mxu0 }
  0xe0   :  { %v245_v28 = vpack.c.bf16 %v2710_v25, %v2706_v21  ;;  %v2732_v46 = vadd.f32 %v2173_v44, %v1986_v19  ;;  %v182_v47 = vpop.f32.mrb[3].mxu0  ;;  %v2538_v21 = vmov -inf   ;;  %v3336_v25 = vlaneseq }
  0xe1   :  { %v244_v29 = vpack.c.bf16 %v2712_v27, %v2708_v23  ;;  %v183_v50 = vadd.f32 %v1986_v19, %v182_v47  ;;  %v2397_v23 = vld [vmem:[%s3329_s6] sm:$0xff]   ;;  %261 = vst.msk [vmem:[#allocation3 + $0x10] sm:$0xff] %vm258_vm1, %v2538_v21  ;;  %259 = vst.msk [vmem:[#allocation3] sm:$0xff] %vm258_vm1, %v2538_v21 }
  0xe2   :  { %v243_v53 = vpack.c.bf16 %v2732_v46, %v2730_v41  ;;  %260 = vst.msk [vmem:[#allocation3 + $0x8] sm:$0xff] %vm258_vm1, %v2538_v21  ;;  %262 = vst.msk [vmem:[#allocation3 + $0x18] sm:$0xff] %vm258_vm1, %v2538_v21  ;;  %2204 = vmatprep.subr.bf16.mxu0 %v2397_v23 }
  0xe3   :  { %v2180_v30 = vpop.f32.mrb[4].mxu1  ;;  %v242_v56 = vpack.c.bf16 %v183_v50, %v180_v43  ;;  %263 = vst.msk [vmem:[#allocation3 + $0x20] sm:$0xff] %vm258_vm1, %v2538_v21  ;;  %264 = vst.msk [vmem:[#allocation3 + $0x28] sm:$0xff] %vm258_vm1, %v2538_v21  ;;  %2205 = vmatpush3.bf16.msra.mxu0 %v2397_v23 }
  0xe4   :  { %v2718_v31 = vadd.f32 %v2180_v30, %v1986_v19  ;;  %v211_v32 = vpop.f32.mrb[5].mxu1  ;;  %265 = vst.msk [vmem:[#allocation3 + $0x30] sm:$0xff] %vm258_vm1, %v2538_v21  ;;  %266 = vst.msk [vmem:[#allocation3 + $0x38] sm:$0xff] %vm258_vm1, %v2538_v21 }
  0xe5   :  { %v2720_v33 = vadd.f32 %v1986_v19, %v211_v32  ;;  %v2181_v34 = vpop.f32.mrb[6].mxu1  ;;  %2238 = vmatprep.mubr.bf16.mxu1 %v242_v56  ;;  %267 = vst.msk [vmem:[#allocation3 + $0x40] sm:$0xff] %vm258_vm1, %v2538_v21  ;;  %268 = vst.msk [vmem:[#allocation3 + $0x48] sm:$0xff] %vm258_vm1, %v2538_v21 }
  0xe6   :  { %v2722_v35 = vadd.f32 %v2181_v34, %v1986_v19  ;;  %v214_v36 = vpop.f32.mrb[7].mxu1  ;;  %269 = vst.msk [vmem:[#allocation3 + $0x50] sm:$0xff] %vm258_vm1, %v2538_v21  ;;  %270 = vst.msk [vmem:[#allocation3 + $0x58] sm:$0xff] %vm258_vm1, %v2538_v21  ;;  %2207 = vmatmul.mubr.msk.bf16.vlgmr.msra.gmra.mrb[4].mxu0 %vm120_vm0, %v2657_v12  ;;  %v2803_v12 = vand.u32 127, %v3336_v25 }
  0xe7   :  { %v2724_v37 = vadd.f32 %v1986_v19, %v214_v36  ;;  %271 = vst.msk [vmem:[#allocation3 + $0x60] sm:$0xff] %vm258_vm1, %v2538_v21  ;;  %272 = vst.msk [vmem:[#allocation3 + $0x68] sm:$0xff] %vm258_vm1, %v2538_v21  ;;  %2210 = vmatprep.mubr.msk.bf16.mxu0 %vm120_vm0, %v2662_v13 }
  0xe8   :  { %v247_v38 = vpack.c.bf16 %v2722_v35, %v2718_v31  ;;  %273 = vst.msk [vmem:[#allocation3 + $0x70] sm:$0xff] %vm258_vm1, %v2538_v21  ;;  %274 = vst.msk [vmem:[#allocation3 + $0x78] sm:$0xff] %vm258_vm1, %v2538_v21  ;;  %vm746_vm2 = vcmp.lt.s32.totalorder %v2803_v12, 8 }
  0xe9   :  { %v246_v40 = vpack.c.bf16 %v2724_v37, %v2720_v33 }
  0xeb   :  { %v2184_v45 = vpop.f32.mrb[8].mxu1 }
  0xec   :  { %v2734_v48 = vadd.f32 %v2184_v45, %v1986_v19  ;;  %v227_v49 = vpop.f32.mrb[9].mxu1 }
  0xed   :  { %v2736_v51 = vadd.f32 %v1986_v19, %v227_v49  ;;  %v2185_v52 = vpop.f32.mrb[10].mxu1 }
  0xee   :  { %v2740_v54 = vadd.f32 %v2185_v52, %v1986_v19  ;;  %v230_v55 = vpop.f32.mrb[11].mxu1  ;;  %2211 = vmatmul.mubr.msk.bf16.gmra.mrb[8].mxu0 %vm120_vm0, %v2671_v14 }
  0xef   :  { %v2742_v57 = vadd.f32 %v1986_v19, %v230_v55  ;;  %2214 = vmatprep.mubr.msk.bf16.mxu0 %vm120_vm0, %v2676_v15 }
  0xf0   :  { %v249_v58 = vpack.c.bf16 %v2740_v54, %v2734_v48 }
  0xf1   :  { %v248_v59 = vpack.c.bf16 %v2742_v57, %v2736_v51 }
  0xf3   :  { %v2190_v60 = vpop.f32.mrb[12].mxu1 }
  0xf4   :  { %v437_v62 = vpop.f32.mrb[13].mxu1  ;;  %v446_v0 = vadd.f32 %v2190_v60, %v2004_v61 }
  0xf5   :  { %v2191_v63 = vpop.f32.mrb[14].mxu1  ;;  %v438_v3 = vadd.f32 %v2004_v61, %v437_v62 }
  0xf6   :  { %v449_v1 = vadd.f32 %v2191_v63, %v2004_v61  ;;  %v440_v2 = vpop.f32.mrb[15].mxu1  ;;  %2215 = vmatmul.mubr.msk.bf16.gmra.mrb[12].mxu0 %vm120_vm0, %v2685_v16 }
  0xf7   :  { %v441_v4 = vadd.f32 %v2004_v61, %v440_v2  ;;  %2218 = vmatprep.mubr.msk.bf16.mxu0 %vm120_vm0, %v2690_v17 }
  0xf8   :  { %v621_v5 = vpack.c.bf16 %v449_v1, %v446_v0 }
  0xf9   :  { %v620_v6 = vpack.c.bf16 %v441_v4, %v438_v3 }
  0xfb   :  { %2222 = vmatprep.subr.bf16.mxu1 %v620_v6  ;;  %v2194_v7 = vpop.f32.mrb[16].mxu1 }
  0xfc   :  { %2223 = vmatpush3.bf16.xpose.msra.mxu1 %v620_v6  ;;  %v462_v8 = vadd.f32 %v2194_v7, %v2004_v61  ;;  %v453_v9 = vpop.f32.mrb[17].mxu1  ;;  %v2539_v7 = vmov 0  }
  0xfd   :  { %2224 = vmatprep.subr.bf16.mxu1 %v621_v5  ;;  %v454_v10 = vadd.f32 %v2004_v61, %v453_v9  ;;  %v2195_v11 = vpop.f32.mrb[18].mxu1  ;;  %2378 = vset.pattern.permute.xlu1 %v2539_v7 }
  0xfe   :  { %v465_v19 = vadd.f32 %v2195_v11, %v2004_v61  ;;  %v456_v20 = vpop.f32.mrb[19].mxu1  ;;  %2219 = vmatmul.mubr.msk.bf16.gmra.mrb[16].mxu0 %vm120_vm0, %v2699_v18  ;;  %2377 = vset.pattern.permute.xlu0 %v2539_v7 }
  0xff   :  { %v457_v22 = vadd.f32 %v2004_v61, %v456_v20 }
 0x100   :  { %v623_v24 = vpack.c.bf16 %v465_v19, %v462_v8 }
 0x101   :  { %v622_v26 = vpack.c.bf16 %v457_v22, %v454_v10 }
 0x103   :  { %v2198_v30 = vpop.f32.mrb[20].mxu1 }
 0x104   :  { %2225 = vmatpush3.bf16.xpose.msra.mxu1 %v621_v5  ;;  %v478_v32 = vadd.f32 %v2198_v30, %v2004_v61  ;;  %v469_v34 = vpop.f32.mrb[21].mxu1 }
 0x105   :  { %2226 = vmatprep.subr.bf16.mxu1 %v622_v26  ;;  %v470_v36 = vadd.f32 %v2004_v61, %v469_v34  ;;  %v2199_v39 = vpop.f32.mrb[22].mxu1 }
 0x106   :  { %v481_v42 = vadd.f32 %v2199_v39, %v2004_v61  ;;  %v472_v43 = vpop.f32.mrb[23].mxu1  ;;  %v3337_v39 = vmov 0.0  }
 0x107   :  { %v473_v44 = vadd.f32 %v2004_v61, %v472_v43  ;;  %275 = vst.msk [vmem:[#allocation4] sm:$0xff] %vm258_vm1, %v3337_v39  ;;  %276 = vst.msk [vmem:[#allocation4 + $0x8] sm:$0xff] %vm258_vm1, %v3337_v39 }
 0x108   :  { %v625_v45 = vpack.c.bf16 %v481_v42, %v478_v32  ;;  %277 = vst.msk [vmem:[#allocation4 + $0x10] sm:$0xff] %vm258_vm1, %v3337_v39  ;;  %278 = vst.msk [vmem:[#allocation4 + $0x18] sm:$0xff] %vm258_vm1, %v3337_v39 }
 0x109   :  { %v624_v47 = vpack.c.bf16 %v473_v44, %v470_v36  ;;  %279 = vst.msk [vmem:[#allocation4 + $0x20] sm:$0xff] %vm258_vm1, %v3337_v39  ;;  %280 = vst.msk [vmem:[#allocation4 + $0x28] sm:$0xff] %vm258_vm1, %v3337_v39 }
 0x10a   :  { %281 = vst.msk [vmem:[#allocation4 + $0x30] sm:$0xff] %vm258_vm1, %v3337_v39  ;;  %282 = vst.msk [vmem:[#allocation4 + $0x38] sm:$0xff] %vm258_vm1, %v3337_v39 }
 0x10b   :  { %v2202_v49 = vpop.f32.mrb[24].mxu1  ;;  %283 = vst.msk [vmem:[#allocation4 + $0x40] sm:$0xff] %vm258_vm1, %v3337_v39  ;;  %284 = vst.msk [vmem:[#allocation4 + $0x48] sm:$0xff] %vm258_vm1, %v3337_v39 }
 0x10c   :  { %2227 = vmatpush3.bf16.xpose.msra.mxu1 %v622_v26  ;;  %v494_v50 = vadd.f32 %v2202_v49, %v2004_v61  ;;  %v485_v51 = vpop.f32.mrb[25].mxu1  ;;  %285 = vst.msk [vmem:[#allocation4 + $0x50] sm:$0xff] %vm258_vm1, %v3337_v39  ;;  %286 = vst.msk [vmem:[#allocation4 + $0x58] sm:$0xff] %vm258_vm1, %v3337_v39  ;;  %v2921_v49 = vld [vmem:[%s3330_s7] ss:$0 sm:$0xff] }
 0x10d   :  { %2228 = vmatprep.subr.bf16.mxu1 %v623_v24  ;;  %v486_v52 = vadd.f32 %v2004_v61, %v485_v51  ;;  %v2203_v55 = vpop.f32.mrb[26].mxu1  ;;  %287 = vst.msk [vmem:[#allocation4 + $0x60] sm:$0xff] %vm258_vm1, %v3337_v39  ;;  %288 = vst.msk [vmem:[#allocation4 + $0x68] sm:$0xff] %vm258_vm1, %v3337_v39 }
 0x10e   :  { %v497_v56 = vadd.f32 %v2203_v55, %v2004_v61  ;;  %v488_v57 = vpop.f32.mrb[27].mxu1  ;;  %289 = vst.msk [vmem:[#allocation4 + $0x70] sm:$0xff] %vm258_vm1, %v3337_v39  ;;  %290 = vst.msk [vmem:[#allocation4 + $0x78] sm:$0xff] %vm258_vm1, %v3337_v39 }
 0x10f   :  { %v489_v60 = vadd.f32 %v2004_v61, %v488_v57 }
 0x110   :  { %v627_v62 = vpack.c.bf16 %v497_v56, %v494_v50 }
 0x111   :  { %v626_v63 = vpack.c.bf16 %v489_v60, %v486_v52 }
 0x114   :  { %2229 = vmatpush3.bf16.xpose.msra.mxu1 %v623_v24 }
 0x115   :  { %2230 = vmatprep.subr.bf16.mxu1 %v624_v47 }
 0x11c   :  { %2231 = vmatpush3.bf16.xpose.msra.mxu1 %v624_v47 }
 0x11d   :  { %2232 = vmatprep.subr.bf16.mxu1 %v625_v45 }
 0x124   :  { %2233 = vmatpush3.bf16.xpose.msra.mxu1 %v625_v45 }
 0x125   :  { %2234 = vmatprep.subr.bf16.mxu1 %v626_v63 }
 0x12c   :  { %2235 = vmatpush3.bf16.xpose.msra.mxu1 %v626_v63 }
 0x12d   :  { %2236 = vmatprep.subr.bf16.mxu1 %v627_v62 }
 0x134   :  { %2237 = vmatpush3.bf16.xpose.msra.mxu1 %v627_v62 }
 0x13b   :  { %2239 = vmatmul.mubr.bf16.vlgmr.msra.gmra.mrb[28].mxu1 %v243_v53 }
 0x13c   :  { %2242 = vmatprep.mubr.bf16.mxu1 %v244_v29 }
 0x143   :  { %2243 = vmatmul.mubr.bf16.gmra.mrb[32].mxu1 %v245_v28 }
 0x144   :  { %2246 = vmatprep.mubr.bf16.mxu1 %v246_v40 }
 0x14b   :  { %2247 = vmatmul.mubr.bf16.gmra.mrb[36].mxu1 %v247_v38 }
 0x14c   :  { %2250 = vmatprep.mubr.bf16.mxu1 %v248_v59 }
 0x153   :  { %2251 = vmatmul.mubr.bf16.gmra.mrb[40].mxu1 %v249_v58 }
 0x1b9   :  { %v2208_v50 = vpop.f32.mrb[4].mxu0 }
 0x1ba   :  { %v558_v51 = vadd.f32 %v2208_v50, %v2921_v49  ;;  %v549_v52 = vpop.f32.mrb[5].mxu0 }
 0x1bb   :  { %v550_v55 = vadd.f32 %v2921_v49, %v549_v52  ;;  %v2209_v56 = vpop.f32.mrb[6].mxu0 }
 0x1bc   :  { %v561_v57 = vadd.f32 %v2209_v56, %v2921_v49  ;;  %v552_v60 = vpop.f32.mrb[7].mxu0 }
 0x1bd   :  { %v553_v62 = vadd.f32 %v2921_v49, %v552_v60 }
 0x1be   :  { %v1221_v63 = vpack.c.bf16 %v561_v57, %v558_v51  ;;  %v2984_v57 = vld [vmem:[#allocation3 + $0x30] sm:$0xff] }
 0x1bf   :  { %v1220_v23 = vpack.c.bf16 %v553_v62, %v550_v55 }
 0x1c1   :  { %v2212_v21 = vpop.f32.mrb[8].mxu0  ;;  %2254 = vmatprep.subr.bf16.mxu0 %v1220_v23 }
 0x1c2   :  { %v574_v12 = vadd.f32 %v2212_v21, %v2921_v49  ;;  %2255 = vmatpush3.bf16.msra.mxu0 %v1220_v23  ;;  %v2991_v23 = vld [vmem:[#allocation3 + $0x28] sm:$0xff] }
 0x1c3   :  { %2256 = vmatprep.subr.bf16.mxu0 %v1221_v63 }
 0x1c6   :  { %2257 = vmatpush3.bf16.msra.mxu0 %v1221_v63 }
 0x20e   :  { %v2240_v13 = vpop.f32.mrb[28].mxu1 }
 0x20f   :  { %v727_v14 = vmul.f32 0.17677669, %v2240_v13  ;;  %v662_v27 = vpop.f32.mrb[29].mxu1  ;;  %v565_v13 = vpop.f32.mrb[9].mxu0 }
 0x210   :  { %v725_v28 = vmul.f32 0.17677669, %v662_v27  ;;  %v2241_v15 = vpop.f32.mrb[30].mxu1  ;;  %v2213_v27 = vpop.f32.mrb[10].mxu0 }
 0x211   :  { %v728_v29 = vmul.f32 0.17677669, %v2241_v15  ;;  %v665_v31 = vpop.f32.mrb[31].mxu1  ;;  %v2808_v16 = vsel %vm746_vm2, %v727_v14, -inf  ;;  %v566_v14 = vadd.f32 %v2921_v49, %v565_v13  ;;  %v568_v15 = vpop.f32.mrb[11].mxu0 }
 0x212   :  { %v726_v17 = vmul.f32 0.17677669, %v665_v31  ;;  %783 = vmax.xlane.f32.xlu1 %v2808_v16  ;;  %v2813_v18 = vsel %vm746_vm2, %v725_v28, -inf  ;;  %v577_v28 = vadd.f32 %v2213_v27, %v2921_v49 }
 0x213   :  { %779 = vmax.xlane.f32.xlu0 %v2813_v18  ;;  %v2818_v33 = vsel %vm746_vm2, %v728_v29, -inf  ;;  %v569_v29 = vadd.f32 %v2921_v49, %v568_v15 }
 0x214   :  { %v2823_v37 = vsel %vm746_vm2, %v726_v17, -inf  ;;  %v1223_v31 = vpack.c.bf16 %v577_v28, %v574_v12 }
 0x215   :  { %v1222_v17 = vpack.c.bf16 %v569_v29, %v566_v14  ;;  %v3003_v29 = vld [vmem:[#allocation3 + $0x40] sm:$0xff] }
 0x216   :  { %785 = vmax.xlane.f32.xlu1 %v2818_v33  ;;  %v2244_v35 = vpop.f32.mrb[32].mxu1 }
 0x217   :  { %781 = vmax.xlane.f32.xlu0 %v2823_v37  ;;  %v678_v38 = vpop.f32.mrb[33].mxu1  ;;  %v731_v53 = vmul.f32 0.17677669, %v2244_v35  ;;  %2258 = vmatprep.subr.bf16.mxu0 %v1222_v17  ;;  %v2931_v35 = vld [vmem:[#allocation3 + $0x10] sm:$0xff] }
 0x218   :  { %v729_v40 = vmul.f32 0.17677669, %v678_v38  ;;  %v2245_v41 = vpop.f32.mrb[34].mxu1  ;;  %2259 = vmatpush3.bf16.msra.mxu0 %v1222_v17  ;;  %v2933_v38 = vld [vmem:[#allocation3] sm:$0xff] }
 0x219   :  { %v732_v46 = vmul.f32 0.17677669, %v2245_v41  ;;  %v681_v48 = vpop.f32.mrb[35].mxu1  ;;  %v2838_v0 = vsel %vm746_vm2, %v731_v53, -inf  ;;  %2260 = vmatprep.subr.bf16.mxu0 %v1223_v31  ;;  %v2941_v53 = vld [vmem:[#allocation3 + $0x18] sm:$0xff] }
 0x21a   :  { %v2828_v54 = vsel %vm746_vm2, %v729_v40, -inf  ;;  %v730_v58 = vmul.f32 0.17677669, %v681_v48 }
 0x21b   :  { %787 = vmax.xlane.f32.xlu0 %v2828_v54  ;;  %v2833_v59 = vsel %vm746_vm2, %v732_v46, -inf }
 0x21c   :  { %793 = vmax.xlane.f32.xlu1 %v2833_v59  ;;  %v2843_v2 = vsel %vm746_vm2, %v730_v58, -inf  ;;  %2261 = vmatpush3.bf16.msra.mxu0 %v1223_v31 }
 0x21e   :  { %v2248_v61 = vpop.f32.mrb[36].mxu1 }
 0x21f   :  { %791 = vmax.xlane.f32.xlu0 %v2838_v0  ;;  %v694_v1 = vpop.f32.mrb[37].mxu1  ;;  %v735_v8 = vmul.f32 0.17677669, %v2248_v61  ;;  %v2948_v61 = vld [vmem:[#allocation3 + $0x8] sm:$0xff] }
 0x220   :  { %v733_v3 = vmul.f32 0.17677669, %v694_v1  ;;  %789 = vmax.xlane.f32.xlu1 %v2843_v2  ;;  %v2249_v4 = vpop.f32.mrb[38].mxu1 }
 0x221   :  { %v736_v5 = vmul.f32 0.17677669, %v2249_v4  ;;  %v697_v6 = vpop.f32.mrb[39].mxu1  ;;  %v2858_v20 = vsel %vm746_vm2, %v735_v8, -inf }
 0x222   :  { %v2848_v9 = vsel %vm746_vm2, %v733_v3, -inf  ;;  %v734_v10 = vmul.f32 0.17677669, %v697_v6  ;;  %v2216_v6 = vpop.f32.mrb[12].mxu0 }
 0x223   :  { %795 = vmax.xlane.f32.xlu0 %v2848_v9  ;;  %v2853_v11 = vsel %vm746_vm2, %v736_v5, -inf  ;;  %v581_v8 = vpop.f32.mrb[13].mxu0 }
 0x224   :  { %801 = vmax.xlane.f32.xlu1 %v2853_v11  ;;  %v2863_v26 = vsel %vm746_vm2, %v734_v10, -inf }
 0x226   :  { %v2252_v19 = vpop.f32.mrb[40].mxu1 }
 0x227   :  { %v739_v22 = vmul.f32 0.17677669, %v2252_v19  ;;  %799 = vmax.xlane.f32.xlu0 %v2858_v20  ;;  %v710_v24 = vpop.f32.mrb[41].mxu1  ;;  %v2965_v19 = vld [vmem:[#allocation3 + $0x20] sm:$0xff] }
 0x228   :  { %797 = vmax.xlane.f32.xlu1 %v2863_v26  ;;  %v2253_v30 = vpop.f32.mrb[42].mxu1  ;;  %v737_v42 = vmul.f32 0.17677669, %v710_v24 }
 0x229   :  { %v740_v32 = vmul.f32 0.17677669, %v2253_v30  ;;  %v713_v34 = vpop.f32.mrb[43].mxu1  ;;  %v2868_v36 = vsel %vm746_vm2, %v739_v22, -inf  ;;  %v2217_v22 = vpop.f32.mrb[14].mxu0  ;;  %v2972_v30 = vld [vmem:[#allocation3 + $0x38] sm:$0xff] }
 0x22a   :  { %v738_v43 = vmul.f32 0.17677669, %v713_v34  ;;  %v2910_v45 = vsel %vm746_vm2, %v737_v42, -inf  ;;  %v582_v34 = vadd.f32 %v2921_v49, %v581_v8  ;;  %v584_v42 = vpop.f32.mrb[15].mxu0  ;;  %v593_v50 = vadd.f32 %v2217_v22, %v2921_v49 }
 0x22b   :  { %807 = vmax.xlane.f32.xlu0 %v2868_v36  ;;  %v2905_v44 = vsel %vm746_vm2, %v740_v32, -inf  ;;  %v590_v32 = vadd.f32 %v2216_v6, %v2921_v49  ;;  %v585_v51 = vadd.f32 %v2921_v49, %v584_v42  ;;  %v2220_v13 = vpop.f32.mrb[16].mxu0 }
 0x22c   :  { %809 = vmax.xlane.f32.xlu1 %v2905_v44  ;;  %v2915_v47 = vsel %vm746_vm2, %v738_v43, -inf  ;;  %v597_v28 = vpop.f32.mrb[17].mxu0 }
 0x22d   :  { %v1225_v60 = vpack.c.bf16 %v593_v50, %v590_v32  ;;  %v1224_v62 = vpack.c.bf16 %v585_v51, %v582_v34  ;;  %v2221_v31 = vpop.f32.mrb[18].mxu0  ;;  %v3026_v50 = vld [vmem:[#allocation3 + $0x50] sm:$0xff] }
 0x22e   :  { %v609_v22 = vadd.f32 %v2221_v31, %v2921_v49  ;;  %v3045_v31 = vld [vmem:[#allocation3 + $0x70] sm:$0xff] }
 0x22f   :  { %803 = vmax.xlane.f32.xlu0 %v2910_v45  ;;  %2262 = vmatprep.subr.bf16.mxu0 %v1224_v62 }
 0x230   :  { %805 = vmax.xlane.f32.xlu1 %v2915_v47  ;;  %2263 = vmatpush3.bf16.msra.mxu0 %v1224_v62 }
 0x231   :  { %2264 = vmatprep.subr.bf16.mxu0 %v1225_v60 }
 0x234   :  { %2265 = vmatpush3.bf16.msra.mxu0 %v1225_v60 }
 0x29f   :  { %v784_v40 = vpop.xlane.xlu1 %783 }
 0x2a0   :  { %v2936_v41 = vmax.f32 %v2931_v35, %v784_v40  ;;  %v780_v46 = vpop.xlane.xlu0 %779  ;;  %v3010_v40 = vld [vmem:[#allocation3 + $0x58] sm:$0xff] }
 0x2a1   :  { %v2939_v48 = vmax.f32 %v2933_v38, %v780_v46  ;;  %v606_v46 = vadd.f32 %v2220_v13, %v2921_v49 }
 0x2a2   :  { %v829_v58 = vsub.f32 %v2931_v35, %v2936_v41  ;;  %1359 = vst.msk [vmem:[#allocation3 + $0x10] sm:$0xff] %vm258_vm1, %v2936_v41  ;;  %887 = vperm.xlu1 %2378, %v2936_v41   ;;  %v2399_v41 = vld [vmem:[%s3331_s8 + $0x8] sm:$0xff]  }
 0x2a3   :  { %1357 = vst.msk [vmem:[#allocation3] sm:$0xff] %vm258_vm1, %v2939_v48  ;;  %v786_v3 = vpop.xlane.xlu1 %785  ;;  %877 = vperm.xlu0 %2377, %v2939_v48   ;;  %v1227_v51 = vpack.c.bf16 %v609_v22, %v606_v46 }
 0x2a4   :  { %v2956_v4 = vmax.f32 %v2941_v53, %v786_v3  ;;  %v782_v5 = vpop.xlane.xlu0 %781  ;;  %v598_v3 = vadd.f32 %v2921_v49, %v597_v28 }
 0x2a5   :  { %v2959_v7 = vmax.f32 %v2948_v61, %v782_v5  ;;  %v600_v5 = vpop.f32.mrb[19].mxu0 }
 0x2a6   :  { %1360 = vst.msk [vmem:[#allocation3 + $0x18] sm:$0xff] %vm258_vm1, %v2956_v4  ;;  %v601_v32 = vadd.f32 %v2921_v49, %v600_v5  ;;  %v3033_v49 = vld [vmem:[#allocation3 + $0x48] sm:$0xff] }
 0x2a7   :  { %v828_v24 = vsub.f32 %v2948_v61, %v2959_v7  ;;  %1358 = vst.msk [vmem:[#allocation3 + $0x8] sm:$0xff] %vm258_vm1, %v2959_v7  ;;  %882 = vperm.xlu1 %2378, %v2959_v7  }
 0x2a8   :  { %v788_v43 = vpop.xlane.xlu0 %787 }
 0x2a9   :  { %v2979_v52 = vmax.f32 %v2965_v19, %v788_v43  ;;  %v794_v55 = vpop.xlane.xlu1 %793 }
 0x2aa   :  { %v2982_v56 = vmax.f32 %v2972_v30, %v794_v55  ;;  %v1226_v55 = vpack.c.bf16 %v601_v32, %v598_v3  ;;  %v3052_v3 = vld [vmem:[#allocation3 + $0x78] sm:$0xff] }
 0x2ab   :  { %1361 = vst.msk [vmem:[#allocation3 + $0x20] sm:$0xff] %vm258_vm1, %v2979_v52  ;;  %892 = vperm.xlu1 %2378, %v2956_v4  }
 0x2ac   :  { %1364 = vst.msk [vmem:[#allocation3 + $0x38] sm:$0xff] %vm258_vm1, %v2982_v56  ;;  %v792_v12 = vpop.xlane.xlu0 %791  ;;  %2266 = vmatprep.subr.bf16.mxu0 %v1226_v55 }
 0x2ad   :  { %v2998_v14 = vmax.f32 %v2984_v57, %v792_v12  ;;  %v790_v27 = vpop.xlane.xlu1 %789  ;;  %2267 = vmatpush3.bf16.msra.mxu0 %v1226_v55  ;;  %v3065_v55 = vld [vmem:[#allocation3 + $0x60] sm:$0xff] }
 0x2ae   :  { %v3001_v15 = vmax.f32 %v2991_v23, %v790_v27  ;;  %2268 = vmatprep.subr.bf16.mxu0 %v1227_v51 }
 0x2af   :  { %1363 = vst.msk [vmem:[#allocation3 + $0x30] sm:$0xff] %vm258_vm1, %v2998_v14  ;;  %907 = vperm.xlu1 %2378, %v2998_v14  }
 0x2b0   :  { %1362 = vst.msk [vmem:[#allocation3 + $0x28] sm:$0xff] %vm258_vm1, %v3001_v15  ;;  %v796_v8 = vpop.xlane.xlu0 %795 }
 0x2b1   :  { %v3021_v34 = vmax.f32 %v3003_v29, %v796_v8  ;;  %v802_v42 = vpop.xlane.xlu1 %801  ;;  %2269 = vmatpush3.bf16.msra.mxu0 %v1227_v51 }
 0x2b2   :  { %v3024_v43 = vmax.f32 %v3010_v40, %v802_v42 }
 0x2b3   :  { %1365 = vst.msk [vmem:[#allocation3 + $0x40] sm:$0xff] %vm258_vm1, %v3021_v34  ;;  %897 = vperm.xlu1 %2378, %v2979_v52  }
 0x2b4   :  { %1368 = vst.msk [vmem:[#allocation3 + $0x58] sm:$0xff] %vm258_vm1, %v3024_v43  ;;  %v800_v12 = vpop.xlane.xlu0 %799 }
 0x2b5   :  { %v3040_v13 = vmax.f32 %v3026_v50, %v800_v12  ;;  %v798_v27 = vpop.xlane.xlu1 %797 }
 0x2b6   :  { %v3043_v28 = vmax.f32 %v3033_v49, %v798_v27  ;;  %v3072_v27 = vld [vmem:[#allocation3 + $0x68] sm:$0xff] }
 0x2b7   :  { %1367 = vst.msk [vmem:[#allocation3 + $0x50] sm:$0xff] %vm258_vm1, %v3040_v13  ;;  %902 = vperm.xlu1 %2378, %v3001_v15  }
 0x2b8   :  { %1366 = vst.msk [vmem:[#allocation3 + $0x48] sm:$0xff] %vm258_vm1, %v3043_v28  ;;  %v808_v8 = vpop.xlane.xlu0 %807  ;;  %922 = vperm.xlu0 %2377, %v3043_v28  }
 0x2b9   :  { %v3060_v22 = vmax.f32 %v3045_v31, %v808_v8  ;;  %v810_v32 = vpop.xlane.xlu1 %809 }
 0x2ba   :  { %v3063_v42 = vmax.f32 %v3052_v3, %v810_v32 }
 0x2bb   :  { %1371 = vst.msk [vmem:[#allocation3 + $0x70] sm:$0xff] %vm258_vm1, %v3060_v22  ;;  %912 = vperm.xlu1 %2378, %v2982_v56  }
 0x2bc   :  { %1372 = vst.msk [vmem:[#allocation3 + $0x78] sm:$0xff] %vm258_vm1, %v3063_v42  ;;  %932 = vperm.xlu0 %2377, %v3024_v43   ;;  %v804_v51 = vpop.xlane.xlu0 %803 }
 0x2bd   :  { %v3080_v32 = vmax.f32 %v3065_v55, %v804_v51  ;;  %v806_v25 = vpop.xlane.xlu1 %805 }
 0x2be   :  { %v3083_v39 = vmax.f32 %v3072_v27, %v806_v25 }
 0x2bf   :  { %1369 = vst.msk [vmem:[#allocation3 + $0x60] sm:$0xff] %vm258_vm1, %v3080_v32  ;;  %917 = vperm.xlu1 %2378, %v3021_v34  }
 0x2c0   :  { %1370 = vst.msk [vmem:[#allocation3 + $0x68] sm:$0xff] %vm258_vm1, %v3083_v39  ;;  %942 = vperm.xlu0 %2377, %v3083_v39  }
 0x2c3   :  { %927 = vperm.xlu1 %2378, %v3040_v13  }
 0x2c4   :  { %952 = vperm.xlu0 %2377, %v3063_v42  }
 0x2c7   :  { %937 = vperm.xlu1 %2378, %v3080_v32  }
 0x2cb   :  { %947 = vperm.xlu1 %2378, %v3060_v22  }
 0x321   :  { %v888_v25 = vpop.permute.xlu1 %887 }
 0x322   :  { %v878_v51 = vpop.permute.xlu0 %877  ;;  %v957_v8 = vsub.f32 %v2808_v16, %v888_v25 }
 0x323   :  { %v955_v12 = vsub.f32 %v2813_v18, %v878_v51 }
 0x324   :  { %v975_v21 = vmul.f32 1.442695, %v957_v8 }
 0x325   :  { %v971_v46 = vmul.f32 1.442695, %v955_v12 }
 0x326   :  { %v883_v60 = vpop.permute.xlu1 %882 }
 0x327   :  { %2414 = vpow2.f32 %v971_v46  ;;  %v956_v5 = vsub.f32 %v2823_v37, %v883_v60 }
 0x329   :  { %v973_v62 = vmul.f32 1.442695, %v956_v5 }
 0x32a   :  { %v893_v6 = vpop.permute.xlu1 %892 }
 0x32b   :  { %2416 = vpow2.f32 %v973_v62  ;;  %v958_v17 = vsub.f32 %v2818_v33, %v893_v6 }
 0x32c   :  { %2418 = vpow2.f32 %v975_v21 }
 0x32d   :  { %v977_v63 = vmul.f32 1.442695, %v958_v17 }
 0x32e   :  { %v908_v10 = vpop.permute.xlu1 %907 }
 0x32f   :  { %2420 = vpow2.f32 %v977_v63  ;;  %v961_v18 = vsub.f32 %v2838_v0, %v908_v10 }
 0x331   :  { %v2415_v1 = vpop.eup %2414  ;;  %v983_v37 = vmul.f32 1.442695, %v961_v18 }
 0x332   :  { %1035 = vadd.xlane.f32.xlu1 %v2415_v1  ;;  %v898_v12 = vpop.permute.xlu1 %897 }
 0x333   :  { %v959_v16 = vsub.f32 %v2828_v54, %v898_v12 }
 0x335   :  { %v2417_v46 = vpop.eup %2416  ;;  %v979_v25 = vmul.f32 1.442695, %v959_v16 }
 0x336   :  { %1037 = vadd.xlane.f32.xlu0 %v2417_v46  ;;  %v903_v60 = vpop.permute.xlu1 %902  ;;  %v1212_v5 = vpack.c.bf16 %v2417_v46, %v2415_v1  ;;  %v2419_v21 = vpop.eup %2418 }
 0x337   :  { %2422 = vpow2.f32 %v979_v25  ;;  %v960_v33 = vsub.f32 %v2843_v2, %v903_v60  ;;  %v923_v17 = vpop.permute.xlu0 %922 }
 0x338   :  { %2270 = vmatprep.mubr.bf16.mxu0 %v1212_v5  ;;  %2424 = vpow2.f32 %v983_v37  ;;  %v964_v0 = vsub.f32 %v2863_v26, %v923_v17 }
 0x339   :  { %v2421_v63 = vpop.eup %2420  ;;  %v981_v6 = vmul.f32 1.442695, %v960_v33 }
 0x33a   :  { %1039 = vadd.xlane.f32.xlu0 %v2419_v21  ;;  %1041 = vadd.xlane.f32.xlu1 %v2421_v63  ;;  %v913_v54 = vpop.permute.xlu1 %912  ;;  %v1213_v10 = vpack.c.bf16 %v2421_v63, %v2419_v21  ;;  %v989_v51 = vmul.f32 1.442695, %v964_v0 }
 0x33b   :  { %2426 = vpow2.f32 %v981_v6  ;;  %v962_v62 = vsub.f32 %v2833_v59, %v913_v54  ;;  %v933_v8 = vpop.permute.xlu0 %932 }
 0x33c   :  { %2271 = vmatmul.mubr.bf16.vlgmr.msra.gmra.mrb[20].mxu0 %v1213_v10  ;;  %v966_v2 = vsub.f32 %v2853_v11, %v933_v8 }
 0x33d   :  { %v985_v1 = vmul.f32 1.442695, %v962_v62 }
 0x33e   :  { %v918_v18 = vpop.permute.xlu1 %917  ;;  %v993_v37 = vmul.f32 1.442695, %v966_v2 }
 0x33f   :  { %2428 = vpow2.f32 %v985_v1  ;;  %v963_v12 = vsub.f32 %v2848_v9, %v918_v18  ;;  %v943_v16 = vpop.permute.xlu0 %942 }
 0x340   :  { %v968_v25 = vsub.f32 %v2915_v47, %v943_v16  ;;  %2430 = vpow2.f32 %v989_v51 }
 0x341   :  { %v2423_v46 = vpop.eup %2422  ;;  %v987_v26 = vmul.f32 1.442695, %v963_v12 }
 0x342   :  { %1043 = vadd.xlane.f32.xlu0 %v2423_v46  ;;  %v928_v60 = vpop.permute.xlu1 %927  ;;  %v2425_v33 = vpop.eup %2424  ;;  %v997_v21 = vmul.f32 1.442695, %v968_v25 }
 0x343   :  { %2432 = vpow2.f32 %v987_v26  ;;  %v965_v59 = vsub.f32 %v2858_v20, %v928_v60  ;;  %v953_v5 = vpop.permute.xlu0 %952  ;;  %v845_v60 = vmul.f32 1.442695, %v828_v24 }
 0x344   :  { %v970_v11 = vsub.f32 %v2905_v44, %v953_v5  ;;  %2434 = vpow2.f32 %v993_v37  ;;  %v3339_v5 = vsub.f32 %v2933_v38, %v2939_v48  ;;  %v2398_v38 = vld [vmem:[%s3331_s8] sm:$0xff]   ;;  %v2400_v48 = vld [vmem:[%s3331_s8 + $0x10] sm:$0xff]  }
 0x345   :  { %v2427_v17 = vpop.eup %2426  ;;  %v991_v63 = vmul.f32 1.442695, %v965_v59  ;;  %v847_v59 = vmul.f32 1.442695, %v829_v58  ;;  %2286 = vmatprep.subr.bf16.mxu0 %v2398_v38  ;;  %v1003_v58 = vld [vmem:[#allocation4] sm:$0xff] }
 0x346   :  { %v1001_v9 = vmul.f32 1.442695, %v970_v11  ;;  %1047 = vadd.xlane.f32.xlu0 %v2425_v33  ;;  %1045 = vadd.xlane.f32.xlu1 %v2427_v17  ;;  %v938_v6 = vpop.permute.xlu1 %937  ;;  %v1214_v47 = vpack.c.bf16 %v2427_v17, %v2423_v46  ;;  %v3340_v11 = vsub.f32 %v2941_v53, %v2956_v4  ;;  %v2401_v53 = vld [vmem:[%s3331_s8 + $0x18] sm:$0xff]   ;;  %v3341_v4 = vsub.f32 %v2965_v19, %v2979_v52 }
 0x347   :  { %2436 = vpow2.f32 %v991_v63  ;;  %v967_v0 = vsub.f32 %v2910_v45, %v938_v6  ;;  %2287 = vmatpush3.bf16.msra.mxu0 %v2398_v38 }
 0x348   :  { %2274 = vmatprep.mubr.bf16.mxu0 %v1214_v47  ;;  %2438 = vpow2.f32 %v997_v21  ;;  %v849_v17 = vmul.f32 1.442695, %v3340_v11  ;;  %2288 = vmatprep.subr.bf16.mxu0 %v2399_v41  ;;  %v851_v24 = vmul.f32 1.442695, %v3341_v4  ;;  %v1004_v47 = vld [vmem:[#allocation4 + $0x8] sm:$0xff] }
 0x349   :  { %v2429_v54 = vpop.eup %2428  ;;  %v995_v20 = vmul.f32 1.442695, %v967_v0  ;;  %2440 = vpow2.f32 %v1001_v9  ;;  %v2402_v9 = vld [vmem:[%s3331_s8 + $0x20] sm:$0xff]   ;;  %v3342_v0 = vsub.f32 %v2984_v57, %v2998_v14  ;;  %v3344_v57 = vsub.f32 %v2972_v30, %v2982_v56  ;;  %v1008_v11 = vld [vmem:[#allocation4 + $0x28] sm:$0xff] }
 0x34a   :  { %1049 = vadd.xlane.f32.xlu1 %v2429_v54  ;;  %v948_v10 = vpop.permute.xlu1 %947  ;;  %v1215_v44 = vpack.c.bf16 %v2429_v54, %v2425_v33  ;;  %v2431_v8 = vpop.eup %2430  ;;  %v843_v33 = vmul.f32 1.442695, %v3339_v5  ;;  %v2403_v4 = vld [vmem:[%s3331_s8 + $0x28] sm:$0xff]  }
 0x34b   :  { %2442 = vpow2.f32 %v995_v20  ;;  %v969_v62 = vsub.f32 %v2868_v36, %v948_v10  ;;  %2289 = vmatpush3.bf16.msra.mxu0 %v2399_v41  ;;  %v855_v54 = vmul.f32 1.442695, %v3342_v0  ;;  %v3343_v10 = vsub.f32 %v2991_v23, %v3001_v15  ;;  %v1012_v0 = vld [vmem:[#allocation4 + $0x48] sm:$0xff] }
 0x34c   :  { %2275 = vmatmul.mubr.bf16.gmra.mrb[24].mxu0 %v1215_v44  ;;  %2290 = vmatprep.subr.bf16.mxu0 %v2400_v48  ;;  %v857_v14 = vmul.f32 1.442695, %v3344_v57  ;;  %v1014_v57 = vld [vmem:[#allocation4 + $0x58] sm:$0xff] }
 0x34d   :  { %v2433_v1 = vpop.eup %2432  ;;  %v999_v51 = vmul.f32 1.442695, %v969_v62  ;;  %v853_v19 = vmul.f32 1.442695, %v3343_v10  ;;  %v1005_v62 = vld [vmem:[#allocation4 + $0x10] sm:$0xff] }
 0x34e   :  { %1053 = vadd.xlane.f32.xlu1 %v2431_v8  ;;  %1051 = vadd.xlane.f32.xlu0 %v2433_v1  ;;  %v1216_v2 = vpack.c.bf16 %v2431_v8, %v2433_v1  ;;  %v2435_v45 = vpop.eup %2434  ;;  %v1006_v8 = vld [vmem:[#allocation4 + $0x18] sm:$0xff] }
 0x34f   :  { %2444 = vpow2.f32 %v999_v51  ;;  %2291 = vmatpush3.bf16.msra.mxu0 %v2400_v48 }
 0x350   :  { %2278 = vmatprep.mubr.bf16.mxu0 %v1216_v2  ;;  %2446 = vpow2.f32 %v845_v60  ;;  %2292 = vmatprep.subr.bf16.mxu0 %v2401_v53 }
 0x351   :  { %v2437_v18 = vpop.eup %2436  ;;  %2448 = vpow2.f32 %v847_v59 }
 0x352   :  { %1057 = vadd.xlane.f32.xlu1 %v2435_v45  ;;  %1055 = vadd.xlane.f32.xlu0 %v2437_v18  ;;  %v1217_v12 = vpack.c.bf16 %v2435_v45, %v2437_v18  ;;  %v2439_v16 = vpop.eup %2438  ;;  %2450 = vpow2.f32 %v843_v33  ;;  %v3345_v45 = vsub.f32 %v3003_v29, %v3021_v34  ;;  %v3347_v29 = vsub.f32 %v3010_v40, %v3024_v43  ;;  %v1009_v33 = vld [vmem:[#allocation4 + $0x30] sm:$0xff] }
 0x353   :  { %v2441_v46 = vpop.eup %2440  ;;  %2452 = vpow2.f32 %v849_v17  ;;  %2293 = vmatpush3.bf16.msra.mxu0 %v2401_v53  ;;  %v3349_v40 = vsub.f32 %v3052_v3, %v3063_v42  ;;  %v1010_v42 = vld [vmem:[#allocation4 + $0x38] sm:$0xff] }
 0x354   :  { %2279 = vmatmul.mubr.bf16.gmra.mrb[28].mxu0 %v1217_v12  ;;  %2454 = vpow2.f32 %v851_v24  ;;  %2294 = vmatprep.subr.bf16.mxu0 %v2402_v9  ;;  %v859_v18 = vmul.f32 1.442695, %v3345_v45  ;;  %v865_v34 = vmul.f32 1.442695, %v3347_v29  ;;  %v3352_v24 = vsub.f32 %v3072_v27, %v3083_v39  ;;  %v2404_v27 = vld [vmem:[%s3331_s8 + $0x30] sm:$0xff]   ;;  %v1015_v29 = vld [vmem:[#allocation4 + $0x60] sm:$0xff] }
 0x355   :  { %v2443_v26 = vpop.eup %2442  ;;  %2456 = vpow2.f32 %v855_v54  ;;  %v873_v43 = vmul.f32 1.442695, %v3349_v40 }
 0x356   :  { %1065 = vadd.xlane.f32.xlu1 %v2441_v46  ;;  %1059 = vadd.xlane.f32.xlu0 %v2443_v26  ;;  %v1218_v36 = vpack.c.bf16 %v2439_v16, %v2443_v26  ;;  %2458 = vpow2.f32 %v853_v19 }
 0x357   :  { %2295 = vmatpush3.bf16.msra.mxu0 %v2402_v9  ;;  %2460 = vpow2.f32 %v857_v14 }
 0x358   :  { %2282 = vmatprep.mubr.bf16.mxu0 %v1218_v36  ;;  %v1007_v36 = vld [vmem:[#allocation4 + $0x20] sm:$0xff]  ;;  %2296 = vmatprep.subr.bf16.mxu0 %v2403_v4 }
 0x359   :  { %v2445_v25 = vpop.eup %2444 }
 0x35a   :  { %1061 = vadd.xlane.f32.xlu1 %v2439_v16  ;;  %1063 = vadd.xlane.f32.xlu0 %v2445_v25  ;;  %v1219_v37 = vpack.c.bf16 %v2441_v46, %v2445_v25  ;;  %v2447_v21 = vpop.eup %2446  ;;  %v3346_v46 = vsub.f32 %v3033_v49, %v3043_v28  ;;  %v3348_v25 = vsub.f32 %v3026_v50, %v3040_v13 }
 0x35b   :  { %v2449_v61 = vpop.eup %2448  ;;  %v1020_v52 = vmul.f32 %v2447_v21, %v1004_v47  ;;  %v3350_v50 = vsub.f32 %v3065_v55, %v3080_v32  ;;  %v3351_v55 = vsub.f32 %v3045_v31, %v3060_v22  ;;  %v1011_v47 = vld [vmem:[#allocation4 + $0x40] sm:$0xff]  ;;  %2297 = vmatpush3.bf16.msra.mxu0 %v2403_v4 }
 0x35c   :  { %2283 = vmatmul.mubr.bf16.gmra.mrb[32].mxu0 %v1219_v37  ;;  %v2451_v7 = vpop.eup %2450  ;;  %v1021_v23 = vmul.f32 %v2449_v61, %v1005_v62  ;;  %v861_v30 = vmul.f32 1.442695, %v3346_v46  ;;  %v863_v37 = vmul.f32 1.442695, %v3348_v25  ;;  %2298 = vmatprep.subr.bf16.mxu0 %v2404_v27 }
 0x35d   :  { %v2453_v35 = vpop.eup %2452  ;;  %v1019_v63 = vmul.f32 %v2451_v7, %v1003_v58  ;;  %v867_v13 = vmul.f32 1.442695, %v3350_v50  ;;  %v871_v32 = vmul.f32 1.442695, %v3351_v55  ;;  %v1017_v50 = vld [vmem:[#allocation4 + $0x70] sm:$0xff] }
 0x35e   :  { %v1022_v15 = vmul.f32 %v2453_v35, %v1006_v8  ;;  %v3164_v26 = vpop.eup %2454 }
 0x35f   :  { %v3172_v28 = vpop.eup %2456  ;;  %v1023_v60 = vmul.f32 %v3164_v26, %v1007_v36  ;;  %2299 = vmatpush3.bf16.msra.mxu0 %v2404_v27 }
 0x360   :  { %v3175_v59 = vpop.eup %2458 }
 0x361   :  { %v3186_v38 = vpop.eup %2460 }
 0x362   :  { %v1026_v31 = vmul.f32 %v3186_v38, %v1010_v42 }
 0x36b   :  { %1123 = vperm.xlu1 %2378, %v2447_v21  }
 0x36f   :  { %1128 = vperm.xlu1 %2378, %v2449_v61  }
 0x370   :  { %1118 = vperm.xlu0 %2377, %v2451_v7   ;;  %v1025_v7 = vmul.f32 %v3172_v28, %v1009_v33 }
 0x374   :  { %1133 = vperm.xlu0 %2377, %v2453_v35   ;;  %v1024_v35 = vmul.f32 %v3175_v59, %v1008_v11 }
 0x3bf   :  { %v1036_v6 = vpop.xlane.xlu1 %1035 }
 0x3c0   :  { %v1067_v20 = vadd.f32 %v1036_v6, %v1019_v63  ;;  %v869_v63 = vmul.f32 1.442695, %v3352_v24 }
 0x3c2   :  { %1084 = vst.msk [vmem:[#allocation4] sm:$0xff] %vm258_vm1, %v1067_v20 }
 0x3c3   :  { %v1038_v44 = vpop.xlane.xlu0 %1037 }
 0x3c4   :  { %v1068_v1 = vadd.f32 %v1038_v44, %v1020_v52 }
 0x3c6   :  { %1085 = vst.msk [vmem:[#allocation4 + $0x8] sm:$0xff] %vm258_vm1, %v1068_v1  ;;  %v1013_v1 = vld [vmem:[#allocation4 + $0x50] sm:$0xff] }
 0x3c7   :  { %v1040_v51 = vpop.xlane.xlu0 %1039  ;;  %v1042_v2 = vpop.xlane.xlu1 %1041 }
 0x3c8   :  { %v1069_v12 = vadd.f32 %v1040_v51, %v1021_v23  ;;  %v1070_v16 = vadd.f32 %v1042_v2, %v1022_v15  ;;  %v2405_v51 = vld [vmem:[%s3331_s8 + $0x38] sm:$0xff]  }
 0x3c9   :  { %v1392_v56 = vld [vmem:[#allocation4] sm:$0xff]  ;;  %2300 = vmatprep.subr.bf16.mxu0 %v2405_v51 }
 0x3ca   :  { %1086 = vst.msk [vmem:[#allocation4 + $0x10] sm:$0xff] %vm258_vm1, %v1069_v12  ;;  %1087 = vst.msk [vmem:[#allocation4 + $0x18] sm:$0xff] %vm258_vm1, %v1070_v16  ;;  %2462 = vrcp.f32 %v1392_v56  ;;  %2301 = vmatpush3.bf16.msra.mxu0 %v2405_v51 }
 0x3cb   :  { %2464 = vpow2.f32 %v859_v18 }
 0x3cc   :  { %2466 = vpow2.f32 %v861_v30 }
 0x3cd   :  { %v1393_v49 = vld [vmem:[#allocation4 + $0x8] sm:$0xff] }
 0x3ce   :  { %2468 = vrcp.f32 %v1393_v49  ;;  %v3353_v49 = vmov 0.0  }
 0x3cf   :  { %v1044_v5 = vpop.xlane.xlu0 %1043  ;;  %2470 = vpow2.f32 %v865_v34  ;;  %v1018_v34 = vld [vmem:[#allocation4 + $0x78] sm:$0xff]  ;;  %2350 = vmatprep.subr.bf16.mxu0 %v3353_v49 }
 0x3d0   :  { %v1071_v17 = vadd.f32 %v1044_v5, %v1023_v60  ;;  %2472 = vpow2.f32 %v863_v37 }
 0x3d1   :  { %v1394_v21 = vld [vmem:[#allocation4 + $0x10] sm:$0xff]  ;;  %v1395_v61 = vld [vmem:[#allocation4 + $0x18] sm:$0xff] }
 0x3d2   :  { %1088 = vst.msk [vmem:[#allocation4 + $0x20] sm:$0xff] %vm258_vm1, %v1071_v17  ;;  %2474 = vrcp.f32 %v1394_v21 }
 0x3d3   :  { %v1048_v41 = vpop.xlane.xlu0 %1047  ;;  %v1046_v3 = vpop.xlane.xlu1 %1045  ;;  %2476 = vrcp.f32 %v1395_v61 }
 0x3d4   :  { %v2463_v48 = vpop.eup %2462  ;;  %2478 = vpow2.f32 %v873_v43  ;;  %v1073_v53 = vadd.f32 %v1048_v41, %v1025_v7  ;;  %v1072_v58 = vadd.f32 %v1046_v3, %v1024_v35 }
 0x3d5   :  { %2480 = vpow2.f32 %v867_v13  ;;  %1426 = vperm.xlu1 %2378, %v2463_v48   ;;  %v3197_v9 = vpop.eup %2464 }
 0x3d6   :  { %1090 = vst.msk [vmem:[#allocation4 + $0x30] sm:$0xff] %vm258_vm1, %v1073_v53  ;;  %1089 = vst.msk [vmem:[#allocation4 + $0x28] sm:$0xff] %vm258_vm1, %v1072_v58  ;;  %v3202_v22 = vpop.eup %2466  ;;  %2482 = vpow2.f32 %v871_v32  ;;  %v1027_v10 = vmul.f32 %v3197_v9, %v1011_v47 }
 0x3d7   :  { %v1050_v6 = vpop.xlane.xlu1 %1049  ;;  %2484 = vpow2.f32 %v869_v63  ;;  %v1028_v19 = vmul.f32 %v3202_v22, %v1012_v0 }
 0x3d8   :  { %v2469_v54 = vpop.eup %2468  ;;  %v1074_v39 = vadd.f32 %v1050_v6, %v1026_v31 }
 0x3d9   :  { %1431 = vperm.xlu0 %2377, %v2469_v54   ;;  %v3207_v20 = vpop.eup %2470  ;;  %v1396_v52 = vld [vmem:[#allocation4 + $0x20] sm:$0xff] }
 0x3da   :  { %1091 = vst.msk [vmem:[#allocation4 + $0x38] sm:$0xff] %vm258_vm1, %v1074_v39  ;;  %v3212_v44 = vpop.eup %2472  ;;  %2486 = vrcp.f32 %v1396_v52  ;;  %v1030_v16 = vmul.f32 %v3207_v20, %v1014_v57  ;;  %v2409_v57 = vld [vmem:[%s3331_s8 + $0x58] sm:$0xff]  }
 0x3db   :  { %v1052_v62 = vpop.xlane.xlu0 %1051  ;;  %v1054_v8 = vpop.xlane.xlu1 %1053  ;;  %v1029_v12 = vmul.f32 %v3212_v44, %v1013_v1  ;;  %v2408_v1 = vld [vmem:[%s3331_s8 + $0x50] sm:$0xff]  }
 0x3dc   :  { %v2475_v14 = vpop.eup %2474  ;;  %v1075_v23 = vadd.f32 %v1052_v62, %v1027_v10  ;;  %v1076_v15 = vadd.f32 %v1054_v8, %v1028_v19  ;;  %v2406_v62 = vld [vmem:[%s3331_s8 + $0x40] sm:$0xff]   ;;  %v2407_v8 = vld [vmem:[%s3331_s8 + $0x48] sm:$0xff]  }
 0x3dd   :  { %v2477_v2 = vpop.eup %2476  ;;  %1436 = vperm.xlu1 %2378, %v2475_v14   ;;  %v1397_v45 = vld [vmem:[#allocation4 + $0x28] sm:$0xff]  ;;  %v1398_v46 = vld [vmem:[#allocation4 + $0x30] sm:$0xff]  ;;  %2318 = vmatprep.subr.bf16.mxu1 %v2406_v62  ;;  %v2410_v14 = vld [vmem:[%s3331_s8 + $0x60] sm:$0xff]  }
 0x3de   :  { %v3217_v18 = vpop.eup %2478  ;;  %1092 = vst.msk [vmem:[#allocation4 + $0x40] sm:$0xff] %vm258_vm1, %v1075_v23  ;;  %1093 = vst.msk [vmem:[#allocation4 + $0x48] sm:$0xff] %vm258_vm1, %v1076_v15  ;;  %1441 = vperm.xlu0 %2377, %v2477_v2   ;;  %2488 = vrcp.f32 %v1397_v45  ;;  %2319 = vmatpush3.bf16.msra.mxu1 %v2406_v62  ;;  %v2411_v45 = vld [vmem:[%s3331_s8 + $0x68] sm:$0xff]  }
 0x3df   :  { %v3223_v30 = vpop.eup %2480  ;;  %v1056_v56 = vpop.xlane.xlu0 %1055  ;;  %2490 = vrcp.f32 %v1398_v46  ;;  %v1034_v11 = vmul.f32 %v3217_v18, %v1018_v34  ;;  %2320 = vmatprep.subr.bf16.mxu1 %v2407_v8 }
 0x3e0   :  { %v1058_v36 = vpop.xlane.xlu1 %1057  ;;  %v1077_v25 = vadd.f32 %v1056_v56, %v1029_v12  ;;  %v3227_v5 = vpop.eup %2482  ;;  %v1031_v33 = vmul.f32 %v3223_v30, %v1015_v29 }
 0x3e1   :  { %v1078_v37 = vadd.f32 %v1058_v36, %v1030_v16  ;;  %1138 = vperm.xlu1 %2378, %v3164_v26   ;;  %v1399_v60 = vld [vmem:[#allocation4 + $0x38] sm:$0xff]  ;;  %v2485_v40 = vpop.eup %2484  ;;  %v1016_v26 = vld [vmem:[#allocation4 + $0x68] sm:$0xff] }
 0x3e2   :  { %1094 = vst.msk [vmem:[#allocation4 + $0x50] sm:$0xff] %vm258_vm1, %v1077_v25  ;;  %1143 = vperm.xlu0 %2377, %v3175_v59   ;;  %2492 = vrcp.f32 %v1399_v60  ;;  %v1033_v59 = vmul.f32 %v3227_v5, %v1017_v50  ;;  %v1032_v61 = vmul.f32 %v2485_v40, %v1016_v26  ;;  %2321 = vmatpush3.bf16.msra.mxu1 %v2407_v8 }
 0x3e3   :  { %1095 = vst.msk [vmem:[#allocation4 + $0x58] sm:$0xff] %vm258_vm1, %v1078_v37  ;;  %v1060_v43 = vpop.xlane.xlu0 %1059  ;;  %2322 = vmatprep.subr.bf16.mxu1 %v2408_v1 }
 0x3e4   :  { %v1066_v17 = vpop.xlane.xlu1 %1065  ;;  %v1079_v13 = vadd.f32 %v1060_v43, %v1031_v33  ;;  %v2487_v7 = vpop.eup %2486 }
 0x3e5   :  { %v1082_v21 = vadd.f32 %v1066_v17, %v1034_v11  ;;  %1148 = vperm.xlu1 %2378, %v3172_v28   ;;  %v1400_v55 = vld [vmem:[#allocation4 + $0x40] sm:$0xff]  ;;  %v1401_v53 = vld [vmem:[#allocation4 + $0x48] sm:$0xff] }
 0x3e6   :  { %1096 = vst.msk [vmem:[#allocation4 + $0x60] sm:$0xff] %vm258_vm1, %v1079_v13  ;;  %1153 = vperm.xlu0 %2377, %v3186_v38   ;;  %2494 = vrcp.f32 %v1400_v55  ;;  %2323 = vmatpush3.bf16.msra.mxu1 %v2408_v1 }
 0x3e7   :  { %1099 = vst.msk [vmem:[#allocation4 + $0x78] sm:$0xff] %vm258_vm1, %v1082_v21  ;;  %v1064_v35 = vpop.xlane.xlu0 %1063  ;;  %2496 = vrcp.f32 %v1401_v53  ;;  %2324 = vmatprep.subr.bf16.mxu1 %v2409_v57 }
 0x3e8   :  { %v1062_v41 = vpop.xlane.xlu1 %1061  ;;  %v2489_v3 = vpop.eup %2488  ;;  %v1081_v42 = vadd.f32 %v1064_v35, %v1033_v59 }
 0x3e9   :  { %v1080_v48 = vadd.f32 %v1062_v41, %v1032_v61  ;;  %1446 = vperm.xlu1 %2378, %v2487_v7   ;;  %v2491_v28 = vpop.eup %2490  ;;  %v1402_v38 = vld [vmem:[#allocation4 + $0x50] sm:$0xff] }
 0x3ea   :  { %1098 = vst.msk [vmem:[#allocation4 + $0x70] sm:$0xff] %vm258_vm1, %v1081_v42  ;;  %1451 = vperm.xlu0 %2377, %v2489_v3   ;;  %v1403_v58 = vld [vmem:[#allocation4 + $0x58] sm:$0xff]  ;;  %2498 = vrcp.f32 %v1402_v38  ;;  %2325 = vmatpush3.bf16.msra.mxu1 %v2409_v57 }
 0x3eb   :  { %1097 = vst.msk [vmem:[#allocation4 + $0x68] sm:$0xff] %vm258_vm1, %v1080_v48  ;;  %2500 = vrcp.f32 %v1403_v58  ;;  %2326 = vmatprep.subr.bf16.mxu1 %v2410_v14 }
 0x3ec   :  { %v2493_v32 = vpop.eup %2492  ;;  %v1124_v34 = vpop.permute.xlu1 %1123 }
 0x3ed   :  { %1456 = vperm.xlu1 %2378, %v2491_v28   ;;  %v1404_v63 = vld [vmem:[#allocation4 + $0x60] sm:$0xff] }
 0x3ee   :  { %1461 = vperm.xlu0 %2377, %v2493_v32   ;;  %2502 = vrcp.f32 %v1404_v63  ;;  %2327 = vmatpush3.bf16.msra.mxu1 %v2410_v14 }
 0x3ef   :  { %2328 = vmatprep.subr.bf16.mxu1 %v2411_v45  ;;  %v1119_v25 = vpop.permute.xlu0 %1118 }
 0x3f0   :  { %v2495_v4 = vpop.eup %2494  ;;  %v1129_v37 = vpop.permute.xlu1 %1128  ;;  %v1196_v33 = vmul.f32 0.0, %v1119_v25 }
 0x3f1   :  { %1158 = vperm.xlu1 %2378, %v3197_v9   ;;  %v2497_v24 = vpop.eup %2496  ;;  %v1406_v9 = vld [vmem:[#allocation4 + $0x70] sm:$0xff]  ;;  %v1198_v50 = vmul.f32 0.0, %v1129_v37 }
 0x3f2   :  { %1163 = vperm.xlu0 %2377, %v3202_v22   ;;  %v1405_v6 = vld [vmem:[#allocation4 + $0x68] sm:$0xff]  ;;  %v1407_v22 = vld [vmem:[#allocation4 + $0x78] sm:$0xff]  ;;  %2329 = vmatpush3.bf16.msra.mxu1 %v2411_v45 }
 0x3f3   :  { %2504 = vrcp.f32 %v1405_v6  ;;  %v1134_v60 = vpop.permute.xlu0 %1133 }
 0x3f4   :  { %v2499_v31 = vpop.eup %2498  ;;  %2506 = vrcp.f32 %v1406_v9  ;;  %v1199_v21 = vmul.f32 0.0, %v1134_v60 }
 0x3f5   :  { %1168 = vperm.xlu1 %2378, %v3212_v44   ;;  %v2501_v47 = vpop.eup %2500  ;;  %2508 = vrcp.f32 %v1407_v22 }
 0x3f6   :  { %1173 = vperm.xlu0 %2377, %v3207_v20   ;;  %v1915_v20 = vld [vmem:[#allocation6] sm:$0x1] }
 0x3f8   :  { %v2503_v0 = vpop.eup %2502 }
 0x3f9   :  { %1466 = vperm.xlu1 %2378, %v2495_v4  }
 0x3fa   :  { %1471 = vperm.xlu0 %2377, %v2497_v24  }
 0x3fd   :  { %1476 = vperm.xlu1 %2378, %v2499_v31   ;;  %v2505_v54 = vpop.eup %2504 }
 0x3fe   :  { %1481 = vperm.xlu0 %2377, %v2501_v47   ;;  %v2507_v39 = vpop.eup %2506 }
 0x3ff   :  { %v2509_v27 = vpop.eup %2508 }
 0x401   :  { %1178 = vperm.xlu1 %2378, %v3223_v30  }
 0x402   :  { %1183 = vperm.xlu0 %2377, %v2485_v40  }
 0x405   :  { %1188 = vperm.xlu1 %2378, %v3227_v5   ;;  %v1197_v5 = vmul.f32 0.0, %v1124_v34 }
 0x406   :  { %1193 = vperm.xlu0 %2377, %v3217_v18  }
 0x409   :  { %1486 = vperm.xlu1 %2378, %v2503_v0  }
 0x40a   :  { %1491 = vperm.xlu0 %2377, %v2505_v54  }
 0x40d   :  { %1496 = vperm.xlu1 %2378, %v2507_v39  }
 0x40e   :  { %1501 = vperm.xlu0 %2377, %v2509_v27  }
 0x40f   :  { %v2272_v10 = vpop.f32.mrb[20].mxu0 }
 0x410   :  { %v1262_v19 = vpop.f32.mrb[21].mxu0  ;;  %v1327_v59 = vadd.f32 %v2272_v10, %v1198_v50 }
 0x411   :  { %v2273_v52 = vpop.f32.mrb[22].mxu0  ;;  %1918 = vperm.xlu1 %2378, %v1915_v20   ;;  %v1325_v40 = vadd.f32 %v1262_v19, %v1196_v33 }
 0x412   :  { %v1265_v44 = vpop.f32.mrb[23].mxu0  ;;  %v1328_v7 = vadd.f32 %v2273_v52, %v1199_v21 }
 0x413   :  { %v1326_v43 = vadd.f32 %v1265_v44, %v1197_v5 }
 0x41f   :  { %v2276_v23 = vpop.f32.mrb[24].mxu0 }
 0x420   :  { %v1278_v15 = vpop.f32.mrb[25].mxu0 }
 0x421   :  { %v2277_v51 = vpop.f32.mrb[26].mxu0 }
 0x422   :  { %v1281_v2 = vpop.f32.mrb[27].mxu0 }
 0x427   :  { %v3266_v18 = vpop.f32.mrb[28].mxu0 }
 0x428   :  { %v3268_v12 = vpop.f32.mrb[29].mxu0 }
 0x429   :  { %v3270_v16 = vpop.f32.mrb[30].mxu0 }
 0x42a   :  { %v1297_v46 = vpop.f32.mrb[31].mxu0 }
 0x42f   :  { %v3272_v30 = vpop.f32.mrb[32].mxu0 }
 0x430   :  { %v3274_v56 = vpop.f32.mrb[33].mxu0 }
 0x431   :  { %v3276_v36 = vpop.f32.mrb[34].mxu0 }
 0x432   :  { %v3278_v29 = vpop.f32.mrb[35].mxu0 }
 0x454   :  { %v1427_v11 = vpop.permute.xlu1 %1426 }
 0x455   :  { %v1504_v26 = vmul.f32 %v1427_v11, %v1325_v40 }
 0x458   :  { %v1432_v17 = vpop.permute.xlu0 %1431 }
 0x459   :  { %v1505_v13 = vmul.f32 %v1432_v17, %v1326_v43 }
 0x45b   :  { %v1520_v61 = vpack.c.bf16 %v1505_v13, %v1504_v26 }
 0x45c   :  { %v1437_v35 = vpop.permute.xlu1 %1436 }
 0x45d   :  { %v1442_v41 = vpop.permute.xlu0 %1441  ;;  %v1506_v3 = vmul.f32 %v1437_v35, %v1327_v59  ;;  %2302 = vmatprep.mubr.bf16.mxu0 %v1520_v61 }
 0x45e   :  { %v1507_v42 = vmul.f32 %v1442_v41, %v1328_v7 }
 0x460   :  { %v1521_v48 = vpack.c.bf16 %v1507_v42, %v1506_v3  ;;  %v1139_v28 = vpop.permute.xlu1 %1138 }
 0x461   :  { %v1144_v55 = vpop.permute.xlu0 %1143  ;;  %v1200_v32 = vmul.f32 0.0, %v1139_v28 }
 0x462   :  { %2303 = vmatmul.mubr.bf16.vlgmr.msra.gmra.mrb[36].mxu0 %v1521_v48  ;;  %v1201_v53 = vmul.f32 0.0, %v1144_v55 }
 0x463   :  { %v1329_v24 = vadd.f32 %v1278_v15, %v1200_v32 }
 0x464   :  { %v1149_v38 = vpop.permute.xlu1 %1148  ;;  %v1330_v31 = vadd.f32 %v1281_v2, %v1201_v53 }
 0x465   :  { %v1154_v58 = vpop.permute.xlu0 %1153  ;;  %v1202_v4 = vmul.f32 0.0, %v1149_v38 }
 0x466   :  { %v1203_v63 = vmul.f32 0.0, %v1154_v58 }
 0x467   :  { %v1331_v0 = vadd.f32 %v2276_v23, %v1202_v4 }
 0x468   :  { %v1447_v6 = vpop.permute.xlu1 %1446  ;;  %v1332_v39 = vadd.f32 %v2277_v51, %v1203_v63 }
 0x469   :  { %v1452_v47 = vpop.permute.xlu0 %1451  ;;  %v1508_v9 = vmul.f32 %v1447_v6, %v1329_v24 }
 0x46a   :  { %v1509_v22 = vmul.f32 %v1452_v47, %v1330_v31 }
 0x46c   :  { %v1522_v54 = vpack.c.bf16 %v1509_v22, %v1508_v9  ;;  %v1457_v27 = vpop.permute.xlu1 %1456 }
 0x46d   :  { %v1462_v20 = vpop.permute.xlu0 %1461  ;;  %v1510_v10 = vmul.f32 %v1457_v27, %v1331_v0 }
 0x46e   :  { %v1511_v19 = vmul.f32 %v1462_v20, %v1332_v39  ;;  %2306 = vmatprep.mubr.bf16.mxu0 %v1522_v54 }
 0x470   :  { %v1523_v52 = vpack.c.bf16 %v1511_v19, %v1510_v10  ;;  %v1159_v44 = vpop.permute.xlu1 %1158 }
 0x471   :  { %v1164_v62 = vpop.permute.xlu0 %1163  ;;  %v1204_v8 = vmul.f32 0.0, %v1159_v44 }
 0x472   :  { %2307 = vmatmul.mubr.bf16.gmra.mrb[40].mxu0 %v1523_v52  ;;  %v1205_v1 = vmul.f32 0.0, %v1164_v62 }
 0x473   :  { %v1333_v2 = vadd.f32 %v3268_v12, %v1204_v8 }
 0x474   :  { %v1169_v57 = vpop.permute.xlu1 %1168  ;;  %v1334_v23 = vadd.f32 %v1297_v46, %v1205_v1 }
 0x475   :  { %v1174_v14 = vpop.permute.xlu0 %1173  ;;  %v1206_v15 = vmul.f32 0.0, %v1169_v57 }
 0x476   :  { %v1207_v45 = vmul.f32 0.0, %v1174_v14 }
 0x477   :  { %v1335_v60 = vadd.f32 %v3266_v18, %v1206_v15 }
 0x478   :  { %v1467_v34 = vpop.permute.xlu1 %1466  ;;  %v1336_v33 = vadd.f32 %v3270_v16, %v1207_v45 }
 0x479   :  { %v1472_v51 = vpop.permute.xlu0 %1471  ;;  %v1512_v25 = vmul.f32 %v1467_v34, %v1333_v2 }
 0x47a   :  { %v1513_v37 = vmul.f32 %v1472_v51, %v1334_v23 }
 0x47c   :  { %v1524_v5 = vpack.c.bf16 %v1513_v37, %v1512_v25  ;;  %v1477_v11 = vpop.permute.xlu1 %1476 }
 0x47d   :  { %v1482_v40 = vpop.permute.xlu0 %1481  ;;  %v1514_v43 = vmul.f32 %v1477_v11, %v1335_v60 }
 0x47e   :  { %v1515_v17 = vmul.f32 %v1482_v40, %v1336_v33  ;;  %2310 = vmatprep.mubr.bf16.mxu0 %v1524_v5 }
 0x480   :  { %v1525_v50 = vpack.c.bf16 %v1515_v17, %v1514_v43  ;;  %v1179_v26 = vpop.permute.xlu1 %1178 }
 0x481   :  { %v1184_v13 = vpop.permute.xlu0 %1183  ;;  %v1208_v12 = vmul.f32 0.0, %v1179_v26 }
 0x482   :  { %2311 = vmatmul.mubr.bf16.gmra.mrb[44].mxu0 %v1525_v50  ;;  %v1209_v46 = vmul.f32 0.0, %v1184_v13 }
 0x483   :  { %v1337_v7 = vadd.f32 %v3274_v56, %v1208_v12  ;;  %v2412_v56 = vld [vmem:[%s3331_s8 + $0x70] sm:$0xff]  }
 0x484   :  { %v1189_v21 = vpop.permute.xlu1 %1188  ;;  %v1338_v35 = vadd.f32 %v3278_v29, %v1209_v46  ;;  %2330 = vmatprep.subr.bf16.mxu1 %v2412_v56 }
 0x485   :  { %v1194_v59 = vpop.permute.xlu0 %1193  ;;  %v1210_v61 = vmul.f32 0.0, %v1189_v21  ;;  %2331 = vmatpush3.bf16.msra.mxu1 %v2412_v56 }
 0x486   :  { %v1211_v18 = vmul.f32 0.0, %v1194_v59 }
 0x487   :  { %v1339_v48 = vadd.f32 %v3272_v30, %v1210_v61  ;;  %v2413_v30 = vld [vmem:[%s3331_s8 + $0x78] sm:$0xff]  }
 0x488   :  { %v1487_v16 = vpop.permute.xlu1 %1486  ;;  %v1340_v55 = vadd.f32 %v3276_v36, %v1211_v18  ;;  %2332 = vmatprep.subr.bf16.mxu1 %v2413_v30  ;;  %v2032_v36 = vld [vmem:[%s3332_s9] ss:$0 sm:$0xff] }
 0x489   :  { %v1492_v41 = vpop.permute.xlu0 %1491  ;;  %v1516_v3 = vmul.f32 %v1487_v16, %v1337_v7  ;;  %2333 = vmatpush3.bf16.msra.mxu1 %v2413_v30 }
 0x48a   :  { %v1517_v42 = vmul.f32 %v1492_v41, %v1338_v35 }
 0x48c   :  { %v1526_v28 = vpack.c.bf16 %v1517_v42, %v1516_v3  ;;  %v1497_v32 = vpop.permute.xlu1 %1496 }
 0x48d   :  { %v1502_v53 = vpop.permute.xlu0 %1501  ;;  %v1518_v38 = vmul.f32 %v1497_v32, %v1339_v48 }
 0x48e   :  { %v1519_v58 = vmul.f32 %v1502_v53, %v1340_v55  ;;  %2314 = vmatprep.mubr.bf16.mxu0 %v1526_v28  ;;  %v2058_v53 = vld [vmem:[%s3332_s9 + $0x1] ss:$0 sm:$0xff] }
 0x490   :  { %v1527_v4 = vpack.c.bf16 %v1519_v58, %v1518_v38 }
 0x492   :  { %2315 = vmatmul.mubr.bf16.gmra.mrb[48].mxu0 %v1527_v4 }
 0x493   :  { %2366 = vmatprep.mubr.msk.bf16.mxu0 %vm2541_vm3, %v3353_v49 }
 0x535   :  { %v2304_v29 = vpop.f32.mrb[36].mxu0 }
 0x536   :  { %v1642_v24 = vadd.f32 %v2304_v29, %v2032_v36  ;;  %v1633_v63 = vpop.f32.mrb[37].mxu0 }
 0x537   :  { %v1634_v31 = vadd.f32 %v2032_v36, %v1633_v63  ;;  %v2305_v6 = vpop.f32.mrb[38].mxu0 }
 0x538   :  { %v1645_v47 = vadd.f32 %v2305_v6, %v2032_v36  ;;  %v1636_v9 = vpop.f32.mrb[39].mxu0  ;;  %v1698_v0 = vmax.f32 %v1642_v24, 0.0 }
 0x539   :  { %v1637_v22 = vadd.f32 %v2032_v36, %v1636_v9  ;;  %v1696_v39 = vmax.f32 %v1634_v31, 0.0 }
 0x53a   :  { %v1699_v54 = vmax.f32 %v1645_v47, 0.0 }
 0x53b   :  { %v1697_v27 = vmax.f32 %v1637_v22, 0.0 }
 0x53c   :  { %v1713_v20 = vpack.c.bf16 %v1699_v54, %v1698_v0 }
 0x53d   :  { %v1712_v10 = vpack.c.bf16 %v1697_v27, %v1696_v39 }
 0x53f   :  { %2334 = vmatprep.mubr.bf16.mxu1 %v1712_v10 }
 0x540   :  { %2335 = vmatmul.mubr.bf16.vlgmr.msra.gmra.mrb[44].mxu1 %v1713_v20 }
 0x545   :  { %v2308_v19 = vpop.f32.mrb[40].mxu0 }
 0x546   :  { %v1658_v52 = vadd.f32 %v2308_v19, %v2032_v36  ;;  %v1649_v44 = vpop.f32.mrb[41].mxu0 }
 0x547   :  { %v1650_v62 = vadd.f32 %v2032_v36, %v1649_v44  ;;  %v2309_v8 = vpop.f32.mrb[42].mxu0 }
 0x548   :  { %v1661_v1 = vadd.f32 %v2309_v8, %v2032_v36  ;;  %v1652_v57 = vpop.f32.mrb[43].mxu0  ;;  %v1702_v15 = vmax.f32 %v1658_v52, 0.0 }
 0x549   :  { %v1653_v14 = vadd.f32 %v2032_v36, %v1652_v57  ;;  %v1700_v45 = vmax.f32 %v1650_v62, 0.0 }
 0x54a   :  { %v1703_v2 = vmax.f32 %v1661_v1, 0.0 }
 0x54b   :  { %v1701_v23 = vmax.f32 %v1653_v14, 0.0 }
 0x54c   :  { %v1715_v34 = vpack.c.bf16 %v1703_v2, %v1702_v15 }
 0x54d   :  { %v1714_v51 = vpack.c.bf16 %v1701_v23, %v1700_v45 }
 0x54f   :  { %2338 = vmatprep.mubr.bf16.mxu1 %v1714_v51 }
 0x550   :  { %2339 = vmatmul.mubr.bf16.gmra.mrb[48].mxu1 %v1715_v34 }
 0x555   :  { %v2312_v25 = vpop.f32.mrb[44].mxu0 }
 0x556   :  { %v1674_v37 = vadd.f32 %v2312_v25, %v2032_v36  ;;  %v1665_v60 = vpop.f32.mrb[45].mxu0 }
 0x557   :  { %v1666_v5 = vadd.f32 %v2032_v36, %v1665_v60  ;;  %v2313_v33 = vpop.f32.mrb[46].mxu0 }
 0x558   :  { %v1677_v11 = vadd.f32 %v2313_v33, %v2032_v36  ;;  %v1668_v40 = vpop.f32.mrb[47].mxu0  ;;  %v1706_v17 = vmax.f32 %v1674_v37, 0.0 }
 0x559   :  { %v1669_v43 = vadd.f32 %v2032_v36, %v1668_v40  ;;  %v1704_v26 = vmax.f32 %v1666_v5, 0.0 }
 0x55a   :  { %v1707_v50 = vmax.f32 %v1677_v11, 0.0 }
 0x55b   :  { %v1705_v13 = vmax.f32 %v1669_v43, 0.0 }
 0x55c   :  { %v1717_v12 = vpack.c.bf16 %v1707_v50, %v1706_v17 }
 0x55d   :  { %v1716_v46 = vpack.c.bf16 %v1705_v13, %v1704_v26 }
 0x55f   :  { %2342 = vmatprep.mubr.bf16.mxu1 %v1716_v46 }
 0x560   :  { %2343 = vmatmul.mubr.bf16.gmra.mrb[52].mxu1 %v1717_v12 }
 0x565   :  { %v2316_v21 = vpop.f32.mrb[48].mxu0 }
 0x566   :  { %v1690_v59 = vadd.f32 %v2316_v21, %v2032_v36  ;;  %v1681_v61 = vpop.f32.mrb[49].mxu0 }
 0x567   :  { %v1682_v7 = vadd.f32 %v2032_v36, %v1681_v61  ;;  %v2317_v18 = vpop.f32.mrb[50].mxu0 }
 0x568   :  { %v1693_v35 = vadd.f32 %v2317_v18, %v2032_v36  ;;  %v1684_v16 = vpop.f32.mrb[51].mxu0  ;;  %v1710_v3 = vmax.f32 %v1690_v59, 0.0 }
 0x569   :  { %v1685_v41 = vadd.f32 %v2032_v36, %v1684_v16  ;;  %v1708_v48 = vmax.f32 %v1682_v7, 0.0 }
 0x56a   :  { %v1711_v42 = vmax.f32 %v1693_v35, 0.0 }
 0x56b   :  { %v1709_v28 = vmax.f32 %v1685_v41, 0.0 }
 0x56c   :  { %v1719_v55 = vpack.c.bf16 %v1711_v42, %v1710_v3  ;;  %v1906_v3 = vld [vmem:[%s3333_s10] sm:$0x1]  ;;  %v3354_v42 = vlaneseq  ;;  %s2514_s10 = scalar_lea.vmem %s1979_s28, 16 }
 0x56d   :  { %v1718_v32 = vpack.c.bf16 %v1709_v28, %v1708_v48  ;;  %p2515_p0 = scmp.ne.s32.totalorder %s1979_s28, %s2514_s10  ;;  %p2520_p2 = scmp.lt.s32.totalorder %s2518_s11, %s2514_s10 }
 0x56e   :  { %v1922_v48 = vshrl.u32 %v3354_v42, 7 }
 0x56f   :  { %2346 = vmatprep.mubr.bf16.mxu1 %v1718_v32  ;;  %p2521_p3 = por %p2520_p2, %p2519_p1 }
 0x570   :  { %2347 = vmatmul.mubr.bf16.gmra.mrb[56].mxu1 %v1719_v55  ;;  %v1923_v28 = vsub.s32 0, %v1922_v48  ;;  %v1919_v55 = vpop.permute.xlu1 %1918 }
 0x571   :  { %p2522_p4 = pnand %p2521_p3, %p2515_p0 }
 0x572   :  { %v1924_v32 = vrot.slane %v1919_v55, %v1923_v28 }
 0x613   :  { %v2336_v38 = vpop.f32.mrb[44].mxu1 }
 0x614   :  { %v1836_v58 = vadd.f32 %v2336_v38, %v2058_v53  ;;  %v1827_v4 = vpop.f32.mrb[45].mxu1 }
 0x615   :  { %v1828_v56 = vadd.f32 %v2058_v53, %v1827_v4  ;;  %v2337_v30 = vpop.f32.mrb[46].mxu1 }
 0x616   :  { %v1839_v36 = vadd.f32 %v2337_v30, %v2058_v53  ;;  %v1830_v29 = vpop.f32.mrb[47].mxu1  ;;  %v1892_v63 = vmax.f32 %v1836_v58, 0.0 }
 0x617   :  { %v1831_v24 = vadd.f32 %v2058_v53, %v1830_v29  ;;  %v1890_v6 = vmax.f32 %v1828_v56, 0.0 }
 0x618   :  { %v1893_v31 = vmax.f32 %v1839_v36, 0.0 }
 0x619   :  { %v1891_v47 = vmax.f32 %v1831_v24, 0.0 }
 0x61a   :  { %v1908_v9 = vpack.c.bf16 %v1893_v31, %v1892_v63 }
 0x61b   :  { %v1907_v22 = vpack.c.bf16 %v1891_v47, %v1890_v6 }
 0x61d   :  { %2351 = vmatpush3.bf16.xpose.msra.mxu0 %v1907_v22 }
 0x61e   :  { %2352 = vmatprep.subr.bf16.mxu0 %v3353_v49 }
 0x623   :  { %v2340_v0 = vpop.f32.mrb[48].mxu1 }
 0x624   :  { %v1852_v54 = vadd.f32 %v2340_v0, %v2058_v53  ;;  %v1843_v39 = vpop.f32.mrb[49].mxu1 }
 0x625   :  { %v1844_v27 = vadd.f32 %v2058_v53, %v1843_v39  ;;  %v2341_v20 = vpop.f32.mrb[50].mxu1  ;;  %2353 = vmatpush3.bf16.xpose.msra.mxu0 %v1908_v9 }
 0x626   :  { %v1855_v10 = vadd.f32 %v2341_v20, %v2058_v53  ;;  %v1846_v19 = vpop.f32.mrb[51].mxu1  ;;  %2354 = vmatprep.subr.bf16.mxu0 %v3353_v49  ;;  %v1896_v44 = vmax.f32 %v1852_v54, 0.0 }
 0x627   :  { %v1847_v52 = vadd.f32 %v2058_v53, %v1846_v19  ;;  %v1894_v8 = vmax.f32 %v1844_v27, 0.0 }
 0x628   :  { %v1897_v62 = vmax.f32 %v1855_v10, 0.0 }
 0x629   :  { %v1895_v1 = vmax.f32 %v1847_v52, 0.0 }
 0x62a   :  { %v1910_v57 = vpack.c.bf16 %v1897_v62, %v1896_v44 }
 0x62b   :  { %v1909_v14 = vpack.c.bf16 %v1895_v1, %v1894_v8 }
 0x62d   :  { %2355 = vmatpush3.bf16.xpose.msra.mxu0 %v1909_v14 }
 0x62e   :  { %2356 = vmatprep.subr.bf16.mxu0 %v3353_v49 }
 0x633   :  { %v2344_v15 = vpop.f32.mrb[52].mxu1 }
 0x634   :  { %v1868_v2 = vadd.f32 %v2344_v15, %v2058_v53  ;;  %v1859_v45 = vpop.f32.mrb[53].mxu1 }
 0x635   :  { %v1860_v23 = vadd.f32 %v2058_v53, %v1859_v45  ;;  %v2345_v34 = vpop.f32.mrb[54].mxu1  ;;  %2357 = vmatpush3.bf16.xpose.msra.mxu0 %v1910_v57 }
 0x636   :  { %v1871_v51 = vadd.f32 %v2345_v34, %v2058_v53  ;;  %v1862_v25 = vpop.f32.mrb[55].mxu1  ;;  %2358 = vmatprep.subr.bf16.mxu0 %v3353_v49  ;;  %v1900_v60 = vmax.f32 %v1868_v2, 0.0 }
 0x637   :  { %v1863_v37 = vadd.f32 %v2058_v53, %v1862_v25  ;;  %v1898_v33 = vmax.f32 %v1860_v23, 0.0 }
 0x638   :  { %v1901_v5 = vmax.f32 %v1871_v51, 0.0 }
 0x639   :  { %v1899_v11 = vmax.f32 %v1863_v37, 0.0 }
 0x63a   :  { %v1912_v40 = vpack.c.bf16 %v1901_v5, %v1900_v60 }
 0x63b   :  { %v1911_v43 = vpack.c.bf16 %v1899_v11, %v1898_v33 }
 0x63d   :  { %2359 = vmatpush3.bf16.xpose.msra.mxu0 %v1911_v43 }
 0x63e   :  { %2360 = vmatprep.subr.bf16.mxu0 %v3353_v49 }
 0x643   :  { %v2348_v17 = vpop.f32.mrb[56].mxu1 }
 0x644   :  { %v1884_v50 = vadd.f32 %v2348_v17, %v2058_v53  ;;  %v1875_v26 = vpop.f32.mrb[57].mxu1 }
 0x645   :  { %v1876_v13 = vadd.f32 %v2058_v53, %v1875_v26  ;;  %v2349_v12 = vpop.f32.mrb[58].mxu1  ;;  %2361 = vmatpush3.bf16.xpose.msra.mxu0 %v1912_v40 }
 0x646   :  { %v1887_v46 = vadd.f32 %v2349_v12, %v2058_v53  ;;  %v1878_v21 = vpop.f32.mrb[59].mxu1  ;;  %2362 = vmatprep.subr.bf16.mxu0 %v3353_v49  ;;  %v1904_v61 = vmax.f32 %v1884_v50, 0.0 }
 0x647   :  { %v1879_v59 = vadd.f32 %v2058_v53, %v1878_v21  ;;  %v1902_v18 = vmax.f32 %v1876_v13, 0.0 }
 0x648   :  { %v1905_v7 = vmax.f32 %v1887_v46, 0.0 }
 0x649   :  { %v1903_v35 = vmax.f32 %v1879_v59, 0.0 }
 0x64a   :  { %v1914_v16 = vpack.c.bf16 %v1905_v7, %v1904_v61 }
 0x64b   :  { %v1913_v41 = vpack.c.bf16 %v1903_v35, %v1902_v18 }
 0x64d   :  { %2363 = vmatpush3.bf16.xpose.msra.mxu0 %v1913_v41 }
 0x64e   :  { %2364 = vmatprep.subr.bf16.mxu0 %v3353_v49 }
 0x655   :  { %2365 = vmatpush3.bf16.xpose.msra.mxu0 %v1914_v16 }
 0x65c   :  { %2367 = vmatmul.mubr.bf16.vlgmr.msra.gmra.mrb[52].mxu0 %v1906_v3 }
 0x72f   :  { %v1959_v53 = vpop.f32.mrb[52].mxu0 }
 0x730   :  { %v1960_v38 = vadd.f32 %v1959_v53, %v1924_v32  ;;  %v2368_v58 = vpop.f32.mrb[53].mxu0 }
 0x731   :  { %v1962_v4 = vpop.f32.mrb[54].mxu0 }
 0x732   :  { %v2067_v56 = vmul.f32 -1.442695, %v1960_v38  ;;  %v2369_v30 = vpop.f32.mrb[55].mxu0 }
 0x734   :  { %2510 = vpow2.f32 %v2067_v56 }
 0x73e   :  { %v2511_v36 = vpop.eup %2510 }
 0x73f   :  { %v1968_v49 = vadd.f32 1.0, %v2511_v36 }
 0x741   :  { %2512 = vrcp.f32 %v1968_v49 }
 0x74b   :  { %v2513_v29 = vpop.eup %2512 }
 0x74c   :  { %1971 = vst [vmem:[#allocation7] sm:$0x1] %v2513_v29 }
 0x74d   :  { %2525 = shalt.err (!%p2522_p4)
}
 0x74e   :  { %s2526_s2 = scalar_lea.hbm %s3335_s12, 16 }
 0x74f   :  { %p2527_p5 = scmp.ne.s32.totalorder %s3335_s12, %s2526_s2  ;;  %p2530_p6 = scmp.lt.u32.totalorder %s2526_s2, %s3335_s12 }
 0x751   :  { %p2532_p7 = pnand %p2530_p6, %p2527_p5 }
 0x753   :  { %2535 = shalt.err (!%p2532_p7)
}
 0x754   :  { %1981 = dma.vmem_to_hbm [thread:$0]  %s1979_s28, 16, %s3335_s12, [#allocation8]  }
 0x755   :  { %2536 = dma.done.wait [#allocation8], 16  }
 0x756   :  { %2537 = vsyncadd [#allocation8], 4294967280 }
 0x757   :  { %1985 = vsyncpa [#allocation8], 1 }

</bundles_post_ra>
